<compile_context>
chip_gen: v7x
topology: tpu7x:2x2x1
jax: 0.10.0
libtpu: 0.0.40
codegen_flags: <defaults>
</compile_context>

<pallas_src>
import jax
import jax.numpy as jnp
from jax.experimental import pallas as pl
from jax.experimental.pallas import tpu as pltpu


_UNROLL_MAX_T = 128     # fully unroll the time loops below this length


def _ceil_to(x, m):
    return ((x + m - 1) // m) * m


def _spks_encoder_kernel(x_ref,
                         wif_ref, wib_ref, wh_ref, b_ref,
                         w1_ref, b1_ref,
                         whd_ref, bhd_ref,
                         o_ref,
                         gin_ref):
    tb = x_ref.shape[0]
    T = gin_ref.shape[0]
    C = wif_ref.shape[0]
    H2 = wh_ref.shape[0]          # 2 * rnn_hidden  (hcat = [h_f | h_b])
    G8 = wh_ref.shape[1]          # 8 * rnn_hidden  (all gates, both directions)

    # Resident weights, hoisted out of all loops (loaded once per grid step).
    wi_f = wif_ref[...]           # (C, 8H) bf16 : x[t]      -> fwd gate columns
    wi_b = wib_ref[...]           # (C, 8H) bf16 : x[T-1-t]  -> bwd gate columns
    wh = wh_ref[...]              # (2H, 8H) bf16: block-structured recurrent weight
    b = b_ref[...]                # (1, 8H) f32  : gate biases (sigmoid cols pre-scaled)
    mm = wi_f.dtype

    # ---- prologue: input projections for ALL timesteps (off the serial chain) ----
    # gin[t] = x[t] @ Wi_f + x[T-1-t] @ Wi_b + b, directly in gate-major layout
    # [i_f i_b | f_f f_b | o_f o_b | g_f g_b]; the bwd time reversal is handled
    # here so the recurrence only ever indexes gin[t].
    def _project(x_t, x_rt):
        return (jnp.dot(x_t, wi_f, preferred_element_type=jnp.float32)
                + jnp.dot(x_rt, wi_b, preferred_element_type=jnp.float32)
                + b)

    if T <= _UNROLL_MAX_T:
        for t in range(T):
            x_t = x_ref[:, t * C:(t + 1) * C]
            x_rt = x_ref[:, (T - 1 - t) * C:(T - t) * C]
            gin_ref[t] = _project(x_t, x_rt).astype(gin_ref.dtype)
    else:
        # TODO(synk): dynamic lane-offset slices; fine for correctness, not tuned.
        def _proj_body(t, carry):
            x_t = x_ref[:, pl.ds(t * C, C)]
            x_rt = x_ref[:, pl.ds((T - 1 - t) * C, C)]
            gin_ref[t] = _project(x_t, x_rt).astype(gin_ref.dtype)
            return carry
        jax.lax.fori_loop(0, T, _proj_body, 0)

    # ---- recurrence: one fused (tb,2H)x(2H,8H) MXU matmul + one tanh slab/step ----
    # sigmoid(v) = 0.5*tanh(v/2) + 0.5 with the 0.5 scale folded into the weights,
    # so a single tanh over the full (tb, 8H) slab produces every gate.
    def _step(t, h, c):
        g_rec = jnp.dot(h.astype(mm), wh, preferred_element_type=jnp.float32)
        pre = gin_ref[t].astype(jnp.float32) + g_rec          # (tb, 8H)
        a = jnp.tanh(pre)
        i_g = 0.5 * a[:, 0 * H2:1 * H2] + 0.5                 # [i_f | i_b]
        f_g = 0.5 * a[:, 1 * H2:2 * H2] + 0.5                 # [f_f | f_b]
        o_g = 0.5 * a[:, 2 * H2:3 * H2] + 0.5                 # [o_f | o_b]
        g_g = a[:, 3 * H2:4 * H2]                             # [g_f | g_b]
        c_new = f_g * c + i_g * g_g                           # (tb, 2H) fused fwd/bwd
        h_new = o_g * jnp.tanh(c_new)
        return h_new, c_new

    # Recurrent state is carried as values (f32); bf16 is only ever seen by the MXU.
    h = jnp.zeros((tb, H2), jnp.float32)
    c = jnp.zeros((tb, H2), jnp.float32)
    if T <= _UNROLL_MAX_T:
        for t in range(T):
            h, c = _step(t, h, c)
    else:
        h, c = jax.lax.fori_loop(0, T, lambda t, hc: _step(t, *hc), (h, c))

    # ---- head: relu(Linear(2H->4H)) then fused, lane-padded [fc1 | fc2] ----
    # The h_n.permute(1,2,0).reshape interleave is folded into w1's row order,
    # so hcat = [h_f | h_b] is used directly (no in-kernel lane shuffle).
    x1 = (jnp.dot(h.astype(mm), w1_ref[...], preferred_element_type=jnp.float32)
          + b1_ref[...])
    x1 = jnp.maximum(x1, 0.0)
    y = (jnp.dot(x1.astype(mm), whd_ref[...], preferred_element_type=jnp.float32)
         + bhd_ref[...])
    o_ref[...] = y                                            # lane-dense (tb, P) store


def spks_encoder_forward(src_spks, params, experiment_name, *,
                         matmul_dtype=jnp.bfloat16, max_batch_tile=1024):
    """src_spks: (B, T, C) float32 -> (mu, logvar), each (B, hidden) float32."""
    B, T, C = src_spks.shape
    rnn = params["rnns"][experiment_name]
    H = rnn["wh_f"].shape[0]               # rnn_hidden_size
    G = 4 * H                              # per-direction gate width / Linear width
    G8 = 8 * H                             # fused (both-direction) gate width
    hidden = params["fc1_w"].shape[1]
    f32 = jnp.float32

    # ---- weight prep (tiny arrays; bf16 MXU operands, biases stay f32) ----
    def _place(w, d):
        # w: (rows, 4H) in torch gate order [i, f, g, o] -> (rows, 8H) in the fused
        # gate-major order [i_f i_b | f_f f_b | o_f o_b | g_f g_b]; sigmoid-gate
        # columns are pre-scaled by 0.5 (tanh-identity sigmoid). d=0: fwd, d=1: bwd.
        i_, f_, g_, o_ = w[:, 0:H], w[:, H:2 * H], w[:, 2 * H:3 * H], w[:, 3 * H:4 * H]
        z = jnp.zeros_like(i_)
        blocks = []
        for blk, scale in ((i_, 0.5), (f_, 0.5), (o_, 0.5), (g_, 1.0)):
            blocks.extend((scale * blk, z) if d == 0 else (z, scale * blk))
        return jnp.concatenate(blocks, axis=1)

    wi_f_in = _place(rnn["wi_f"].astype(f32), 0).astype(matmul_dtype)   # (C, 8H)
    wi_b_in = _place(rnn["wi_b"].astype(f32), 1).astype(matmul_dtype)   # (C, 8H)
    wh_big = jnp.concatenate([_place(rnn["wh_f"].astype(f32), 0),       # (2H, 8H)
                              _place(rnn["wh_b"].astype(f32), 1)],
                             axis=0).astype(matmul_dtype)
    b_big = (_place(rnn["b_f"].reshape(1, G).astype(f32), 0)
             + _place(rnn["b_b"].reshape(1, G).astype(f32), 1))          # (1, 8H) f32

    # h_n.permute(1,2,0).reshape(B,2H) interleaves (fwd_j, bwd_j); reorder the
    # Linear(2H->4H) weight rows so the kernel uses hcat = [h_f | h_b] directly.
    w1 = params["w1"].astype(f32)                                        # (2H, 4H)
    w1r = jnp.concatenate([w1[0::2, :], w1[1::2, :]], axis=0).astype(matmul_dtype)
    b1 = params["b1"].reshape(1, G).astype(f32)

    # Fuse fc1|fc2 into one head, lane-padded so the output store is lane-dense.
    w_head = jnp.concatenate([params["fc1_w"], params["fc2_w"]], axis=1)
    b_head = jnp.concatenate([params["fc1_b"], params["fc2_b"]], axis=0)
    P = _ceil_to(2 * hidden, 128)
    if P != 2 * hidden:
        w_head = jnp.pad(w_head, ((0, 0), (0, P - 2 * hidden)))
        b_head = jnp.pad(b_head, (0, P - 2 * hidden))
    w_head = w_head.astype(matmul_dtype)                                 # (4H, P)
    b_head = b_head.reshape(1, P).astype(f32)

    # ---- lane-dense input layout + batch tiling against a real VMEM budget ----
    TC = T * C
    TCp = _ceil_to(TC, 128)
    bytes_per_row = (2 * TCp * 2          # x tile (bf16, double-buffered)
                     + 2 * P * 4          # out tile (f32, double-buffered)
                     + T * G8 * 2         # g_in scratch (bf16)
                     + 4 * 2 * H * 4      # recurrent h/c live values
                     + 4 * G8 * 4)        # per-step gate intermediates (headroom)
    budget = 24 << 20                     # well under the explicit 48 MiB limit below
    tb = max(8, min(_ceil_to(B, 8), max_batch_tile,
                    (budget // bytes_per_row) // 8 * 8))
    if B >= 512:
        # Keep >= 2 grid steps only when tiles stay large: megacore split on v7x,
        # free DMA/compute overlap on single-TC chips.
        tb = min(tb, _ceil_to((B + 1) // 2, 8))
    Bp = _ceil_to(B, tb)
    grid = (Bp // tb,)

    x = src_spks.reshape(B, TC).astype(matmul_dtype)
    x = jnp.pad(x, ((0, Bp - B), (0, TCp - TC)))

    def cspec(shape):
        # Constant (never re-fetched) operand: same block for every grid step.
        return pl.BlockSpec(shape, lambda i: (0,) * len(shape))

    out = pl.pallas_call(
        _spks_encoder_kernel,
        out_shape=jax.ShapeDtypeStruct((Bp, P), jnp.float32),
        grid=grid,
        in_specs=[
            pl.BlockSpec((tb, TCp), lambda i: (i, 0)),     # x tile (lane-dense)
            cspec((C, G8)), cspec((C, G8)),                # input-projection weights
            cspec((2 * H, G8)), cspec((1, G8)),            # recurrent weight + biases
            cspec((2 * H, G)), cspec((1, G)),              # Linear(2H -> 4H)
            cspec((G, P)), cspec((1, P)),                  # fused [fc1 | fc2] head
        ],
        out_specs=pl.BlockSpec((tb, P), lambda i: (i, 0)),
        scratch_shapes=[pltpu.VMEM((T, tb, G8), matmul_dtype)],   # hoisted g_in
        compiler_params=pltpu.CompilerParams(
            dimension_semantics=("parallel",),
            vmem_limit_bytes=48 * 1024 * 1024),
    )(x, wi_f_in, wi_b_in, wh_big, b_big, w1r, b1, w_head, b_head)

    mu = out[:B, :hidden]
    logvar = out[:B, hidden:2 * hidden]
    return mu, logvar


def init_params(key, rnn_hidden_size, hidden_size, useful_cells):
    """Shapes mirror the PyTorch module; weights stored pre-transposed (in, out)."""
    Hr, G = rnn_hidden_size, 4 * rnn_hidden_size
    k_rnn, k_lin, k_fc1, k_fc2 = jax.random.split(key, 4)

    def uni(k, shape, bound):
        return jax.random.uniform(k, shape, jnp.float32, -bound, bound)

    params = {"rnns": {}}
    bound = 1.0 / (Hr ** 0.5)
    for k, (expt, cells) in zip(jax.random.split(k_rnn, len(useful_cells)),
                                useful_cells.items()):
        C = len(cells)
        kk = jax.random.split(k, 8)
        params["rnns"][expt] = {
            "wi_f": uni(kk[0], (G, C), bound).T,     # torch W_ih -> stored (C, 4H)
            "wh_f": uni(kk[1], (G, Hr), bound).T,    # torch W_hh -> stored (H, 4H)
            "b_f": uni(kk[2], (G,), bound) + uni(kk[3], (G,), bound),  # b_ih + b_hh
            "wi_b": uni(kk[4], (G, C), bound).T,
            "wh_b": uni(kk[5], (G, Hr), bound).T,
            "b_b": uni(kk[6], (G,), bound) + uni(kk[7], (G,), bound),
        }

    def linear(k, fan_in, fan_out):
        b = 1.0 / (fan_in ** 0.5)
        kw, kb = jax.random.split(k)
        return uni(kw, (fan_in, fan_out), b), uni(kb, (fan_out,), b)

    params["w1"], params["b1"] = linear(k_lin, 2 * Hr, G)
    params["fc1_w"], params["fc1_b"] = linear(k_fc1, G, hidden_size)
    params["fc2_w"], params["fc2_b"] = linear(k_fc2, G, hidden_size)
    return params


def reference_forward(src_spks, params, experiment_name):
    """Pure-JAX f32 reference following the torch forward exactly."""
    rnn = params["rnns"][experiment_name]
    Hr = rnn["wh_f"].shape[0]

    def run_dir(x_seq, wi, wh, b):
        def step(carry, x_t):
            h, c = carry
            g = x_t @ wi + h @ wh + b
            i = jax.nn.sigmoid(g[:, :Hr])
            f = jax.nn.sigmoid(g[:, Hr:2 * Hr])
            gg = jnp.tanh(g[:, 2 * Hr:3 * Hr])
            o = jax.nn.sigmoid(g[:, 3 * Hr:])
            c = f * c + i * gg
            h = o * jnp.tanh(c)
            return (h, c), None

        h0 = jnp.zeros((x_seq.shape[0], Hr), jnp.float32)
        (h, _), _ = jax.lax.scan(step, (h0, h0), jnp.swapaxes(x_seq, 0, 1))
        return h

    h_f = run_dir(src_spks, rnn["wi_f"], rnn["wh_f"], rnn["b_f"])
    h_b = run_dir(src_spks[:, ::-1, :], rnn["wi_b"], rnn["wh_b"], rnn["b_b"])
    # h_n.permute(1, 2, 0).reshape(B, 2H) interleaves (fwd_j, bwd_j).
    h_cat = jnp.stack([h_f, h_b], axis=-1).reshape(h_f.shape[0], 2 * Hr)
    x = jnp.maximum(h_cat @ params["w1"] + params["b1"], 0.0)
    mu = x @ params["fc1_w"] + params["fc1_b"]
    logvar = x @ params["fc2_w"] + params["fc2_b"]
    return mu, logvar


if __name__ == "__main__":
    rnn_hidden_size = 32        # gates per dir 4H = 128, fused 8H = 256
    hidden_size = 32            # latent dim -> mu/logvar each (B, 32)
    useful_cells = {"expt1": list(range(16)), "expt2": list(range(12))}
    batch, seq = 2, 8

    key = jax.random.PRNGKey(0)
    kx, kp = jax.random.split(key)
    src_spks = jax.random.normal(
        kx, (batch, seq, len(useful_cells["expt1"])), jnp.float32)
    params = init_params(kp, rnn_hidden_size, hidden_size, useful_cells)

    mu, logvar = spks_encoder_forward(src_spks, params, "expt1")
    mu = jax.block_until_ready(mu)
    logvar = jax.block_until_ready(logvar)

    mu_ref, logvar_ref = reference_forward(src_spks, params, "expt1")
    assert mu.shape == (batch, hidden_size)
    assert logvar.shape == (batch, hidden_size)
    # bf16 MXU operands (f32 accumulation) -> loose tolerance vs the f32 reference.
    assert jnp.allclose(mu, mu_ref, atol=5e-2, rtol=5e-2)
    assert jnp.allclose(logvar, logvar_ref, atol=5e-2, rtol=5e-2)

    print("KERNEL_OK")
</pallas_src>

<mosaic_0001>
module attributes {stable_mosaic.version = 11 : i64} {
  func.func @_spks_encoder_kernel(%arg0: i32, %arg1: memref<8x128xbf16, #tpu.memory_space<vmem>>, %arg2: memref<16x256xbf16, #tpu.memory_space<vmem>>, %arg3: memref<16x256xbf16, #tpu.memory_space<vmem>>, %arg4: memref<64x256xbf16, #tpu.memory_space<vmem>>, %arg5: memref<1x256xf32, #tpu.memory_space<vmem>>, %arg6: memref<64x128xbf16, #tpu.memory_space<vmem>>, %arg7: memref<1x128xf32, #tpu.memory_space<vmem>>, %arg8: memref<128x128xbf16, #tpu.memory_space<vmem>>, %arg9: memref<1x128xf32, #tpu.memory_space<vmem>>, %arg10: memref<8x128xf32, #tpu.memory_space<vmem>>, %arg11: memref<8x8x256xbf16, #tpu.memory_space<vmem>>) attributes {dimension_semantics = [#tpu.dimension_semantics<parallel>], iteration_bounds = array<i64: 1>, scalar_prefetch = 0 : i64, scratch_operands = 1 : i64, tpu.core_type = #tpu.core_type<tc>, window_params = [{transform_indices = @transform_0, window_bounds = array<i64: 8, 128>}, {pipeline_mode = #tpu.pipeline_mode<synchronous>, transform_indices = @transform_1, window_bounds = array<i64: 16, 256>}, {pipeline_mode = #tpu.pipeline_mode<synchronous>, transform_indices = @transform_2, window_bounds = array<i64: 16, 256>}, {pipeline_mode = #tpu.pipeline_mode<synchronous>, transform_indices = @transform_3, window_bounds = array<i64: 64, 256>}, {pipeline_mode = #tpu.pipeline_mode<synchronous>, transform_indices = @transform_4, window_bounds = array<i64: 1, 256>}, {pipeline_mode = #tpu.pipeline_mode<synchronous>, transform_indices = @transform_5, window_bounds = array<i64: 64, 128>}, {pipeline_mode = #tpu.pipeline_mode<synchronous>, transform_indices = @transform_6, window_bounds = array<i64: 1, 128>}, {pipeline_mode = #tpu.pipeline_mode<synchronous>, transform_indices = @transform_7, window_bounds = array<i64: 128, 128>}, {pipeline_mode = #tpu.pipeline_mode<synchronous>, transform_indices = @transform_8, window_bounds = array<i64: 1, 128>}, {transform_indices = @transform_9, window_bounds = array<i64: 8, 128>}]} {
    %c0 = arith.constant 0 : index
    %c0_0 = arith.constant 0 : index
    %0 = vector.load %arg2[%c0, %c0_0] : memref<16x256xbf16, #tpu.memory_space<vmem>>, vector<16x256xbf16>
    %c0_1 = arith.constant 0 : index
    %c0_2 = arith.constant 0 : index
    %1 = vector.load %arg3[%c0_1, %c0_2] : memref<16x256xbf16, #tpu.memory_space<vmem>>, vector<16x256xbf16>
    %c0_3 = arith.constant 0 : index
    %c0_4 = arith.constant 0 : index
    %2 = vector.load %arg4[%c0_3, %c0_4] : memref<64x256xbf16, #tpu.memory_space<vmem>>, vector<64x256xbf16>
    %c0_5 = arith.constant 0 : index
    %c0_6 = arith.constant 0 : index
    %3 = vector.load %arg5[%c0_5, %c0_6] : memref<1x256xf32, #tpu.memory_space<vmem>>, vector<1x256xf32>
    %c0_7 = arith.constant 0 : index
    %c0_8 = arith.constant 0 : index
    %4 = vector.load %arg1[%c0_7, %c0_8] : memref<8x128xbf16, #tpu.memory_space<vmem>>, vector<8x16xbf16>
    %c0_9 = arith.constant 0 : index
    %c112 = arith.constant 112 : index
    %5 = vector.load %arg1[%c0_9, %c112] : memref<8x128xbf16, #tpu.memory_space<vmem>>, vector<8x16xbf16>
    %cst = arith.constant dense<0.000000e+00> : vector<8x256xf32>
    %6 = tpu.matmul %4, %0, %cst {dimension_numbers = #tpu.dot_dimension_numbers<[1], [0], [0], [1], [0, 0, 1, 1], [], []>} : vector<8x16xbf16>, vector<16x256xbf16>, vector<8x256xf32> -> vector<8x256xf32>
    %cst_10 = arith.constant dense<0.000000e+00> : vector<8x256xf32>
    %7 = tpu.matmul %5, %1, %cst_10 {dimension_numbers = #tpu.dot_dimension_numbers<[1], [0], [0], [1], [0, 0, 1, 1], [], []>} : vector<8x16xbf16>, vector<16x256xbf16>, vector<8x256xf32> -> vector<8x256xf32>
    %8 = arith.addf %6, %7 : vector<8x256xf32>
    %9 = vector.broadcast %3 : vector<1x256xf32> to vector<8x256xf32>
    %10 = arith.addf %8, %9 : vector<8x256xf32>
    %11 = arith.truncf %10 : vector<8x256xf32> to vector<8x256xbf16>
    %c0_11 = arith.constant 0 : index
    %c0_12 = arith.constant 0 : index
    %c0_13 = arith.constant 0 : index
    %12 = vector.load %arg11[%c0_11, %c0_12, %c0_13] : memref<8x8x256xbf16, #tpu.memory_space<vmem>>, vector<1x8x256xbf16>
    %13 = vector.shape_cast %12 : vector<1x8x256xbf16> to vector<8x256xbf16>
    %14 = vector.shape_cast %11 : vector<8x256xbf16> to vector<1x8x256xbf16>
    tpu.vector_store %arg11[%c0_11, %c0_12, %c0_13], %14 {strides = array<i32>} : memref<8x8x256xbf16, #tpu.memory_space<vmem>>, vector<1x8x256xbf16>,
    %c0_14 = arith.constant 0 : index
    %c16 = arith.constant 16 : index
    %15 = vector.load %arg1[%c0_14, %c16] : memref<8x128xbf16, #tpu.memory_space<vmem>>, vector<8x16xbf16>
    %c0_15 = arith.constant 0 : index
    %c96 = arith.constant 96 : index
    %16 = vector.load %arg1[%c0_15, %c96] : memref<8x128xbf16, #tpu.memory_space<vmem>>, vector<8x16xbf16>
    %cst_16 = arith.constant dense<0.000000e+00> : vector<8x256xf32>
    %17 = tpu.matmul %15, %0, %cst_16 {dimension_numbers = #tpu.dot_dimension_numbers<[1], [0], [0], [1], [0, 0, 1, 1], [], []>} : vector<8x16xbf16>, vector<16x256xbf16>, vector<8x256xf32> -> vector<8x256xf32>
    %cst_17 = arith.constant dense<0.000000e+00> : vector<8x256xf32>
    %18 = tpu.matmul %16, %1, %cst_17 {dimension_numbers = #tpu.dot_dimension_numbers<[1], [0], [0], [1], [0, 0, 1, 1], [], []>} : vector<8x16xbf16>, vector<16x256xbf16>, vector<8x256xf32> -> vector<8x256xf32>
    %19 = arith.addf %17, %18 : vector<8x256xf32>
    %20 = vector.broadcast %3 : vector<1x256xf32> to vector<8x256xf32>
    %21 = arith.addf %19, %20 : vector<8x256xf32>
    %22 = arith.truncf %21 : vector<8x256xf32> to vector<8x256xbf16>
    %c1 = arith.constant 1 : index
    %c0_18 = arith.constant 0 : index
    %c0_19 = arith.constant 0 : index
    %23 = vector.load %arg11[%c1, %c0_18, %c0_19] : memref<8x8x256xbf16, #tpu.memory_space<vmem>>, vector<1x8x256xbf16>
    %24 = vector.shape_cast %23 : vector<1x8x256xbf16> to vector<8x256xbf16>
    %25 = vector.shape_cast %22 : vector<8x256xbf16> to vector<1x8x256xbf16>
    tpu.vector_store %arg11[%c1, %c0_18, %c0_19], %25 {strides = array<i32>} : memref<8x8x256xbf16, #tpu.memory_space<vmem>>, vector<1x8x256xbf16>,
    %c0_20 = arith.constant 0 : index
    %c32 = arith.constant 32 : index
    %26 = vector.load %arg1[%c0_20, %c32] : memref<8x128xbf16, #tpu.memory_space<vmem>>, vector<8x16xbf16>
    %c0_21 = arith.constant 0 : index
    %c80 = arith.constant 80 : index
    %27 = vector.load %arg1[%c0_21, %c80] : memref<8x128xbf16, #tpu.memory_space<vmem>>, vector<8x16xbf16>
    %cst_22 = arith.constant dense<0.000000e+00> : vector<8x256xf32>
    %28 = tpu.matmul %26, %0, %cst_22 {dimension_numbers = #tpu.dot_dimension_numbers<[1], [0], [0], [1], [0, 0, 1, 1], [], []>} : vector<8x16xbf16>, vector<16x256xbf16>, vector<8x256xf32> -> vector<8x256xf32>
    %cst_23 = arith.constant dense<0.000000e+00> : vector<8x256xf32>
    %29 = tpu.matmul %27, %1, %cst_23 {dimension_numbers = #tpu.dot_dimension_numbers<[1], [0], [0], [1], [0, 0, 1, 1], [], []>} : vector<8x16xbf16>, vector<16x256xbf16>, vector<8x256xf32> -> vector<8x256xf32>
    %30 = arith.addf %28, %29 : vector<8x256xf32>
    %31 = vector.broadcast %3 : vector<1x256xf32> to vector<8x256xf32>
    %32 = arith.addf %30, %31 : vector<8x256xf32>
    %33 = arith.truncf %32 : vector<8x256xf32> to vector<8x256xbf16>
    %c2 = arith.constant 2 : index
    %c0_24 = arith.constant 0 : index
    %c0_25 = arith.constant 0 : index
    %34 = vector.load %arg11[%c2, %c0_24, %c0_25] : memref<8x8x256xbf16, #tpu.memory_space<vmem>>, vector<1x8x256xbf16>
    %35 = vector.shape_cast %34 : vector<1x8x256xbf16> to vector<8x256xbf16>
    %36 = vector.shape_cast %33 : vector<8x256xbf16> to vector<1x8x256xbf16>
    tpu.vector_store %arg11[%c2, %c0_24, %c0_25], %36 {strides = array<i32>} : memref<8x8x256xbf16, #tpu.memory_space<vmem>>, vector<1x8x256xbf16>,
    %c0_26 = arith.constant 0 : index
    %c48 = arith.constant 48 : index
    %37 = vector.load %arg1[%c0_26, %c48] : memref<8x128xbf16, #tpu.memory_space<vmem>>, vector<8x16xbf16>
    %c0_27 = arith.constant 0 : index
    %c64 = arith.constant 64 : index
    %38 = vector.load %arg1[%c0_27, %c64] : memref<8x128xbf16, #tpu.memory_space<vmem>>, vector<8x16xbf16>
    %cst_28 = arith.constant dense<0.000000e+00> : vector<8x256xf32>
    %39 = tpu.matmul %37, %0, %cst_28 {dimension_numbers = #tpu.dot_dimension_numbers<[1], [0], [0], [1], [0, 0, 1, 1], [], []>} : vector<8x16xbf16>, vector<16x256xbf16>, vector<8x256xf32> -> vector<8x256xf32>
    %cst_29 = arith.constant dense<0.000000e+00> : vector<8x256xf32>
    %40 = tpu.matmul %38, %1, %cst_29 {dimension_numbers = #tpu.dot_dimension_numbers<[1], [0], [0], [1], [0, 0, 1, 1], [], []>} : vector<8x16xbf16>, vector<16x256xbf16>, vector<8x256xf32> -> vector<8x256xf32>
    %41 = arith.addf %39, %40 : vector<8x256xf32>
    %42 = vector.broadcast %3 : vector<1x256xf32> to vector<8x256xf32>
    %43 = arith.addf %41, %42 : vector<8x256xf32>
    %44 = arith.truncf %43 : vector<8x256xf32> to vector<8x256xbf16>
    %c3 = arith.constant 3 : index
    %c0_30 = arith.constant 0 : index
    %c0_31 = arith.constant 0 : index
    %45 = vector.load %arg11[%c3, %c0_30, %c0_31] : memref<8x8x256xbf16, #tpu.memory_space<vmem>>, vector<1x8x256xbf16>
    %46 = vector.shape_cast %45 : vector<1x8x256xbf16> to vector<8x256xbf16>
    %47 = vector.shape_cast %44 : vector<8x256xbf16> to vector<1x8x256xbf16>
    tpu.vector_store %arg11[%c3, %c0_30, %c0_31], %47 {strides = array<i32>} : memref<8x8x256xbf16, #tpu.memory_space<vmem>>, vector<1x8x256xbf16>,
    %c0_32 = arith.constant 0 : index
    %c64_33 = arith.constant 64 : index
    %48 = vector.load %arg1[%c0_32, %c64_33] : memref<8x128xbf16, #tpu.memory_space<vmem>>, vector<8x16xbf16>
    %c0_34 = arith.constant 0 : index
    %c48_35 = arith.constant 48 : index
    %49 = vector.load %arg1[%c0_34, %c48_35] : memref<8x128xbf16, #tpu.memory_space<vmem>>, vector<8x16xbf16>
    %cst_36 = arith.constant dense<0.000000e+00> : vector<8x256xf32>
    %50 = tpu.matmul %48, %0, %cst_36 {dimension_numbers = #tpu.dot_dimension_numbers<[1], [0], [0], [1], [0, 0, 1, 1], [], []>} : vector<8x16xbf16>, vector<16x256xbf16>, vector<8x256xf32> -> vector<8x256xf32>
    %cst_37 = arith.constant dense<0.000000e+00> : vector<8x256xf32>
    %51 = tpu.matmul %49, %1, %cst_37 {dimension_numbers = #tpu.dot_dimension_numbers<[1], [0], [0], [1], [0, 0, 1, 1], [], []>} : vector<8x16xbf16>, vector<16x256xbf16>, vector<8x256xf32> -> vector<8x256xf32>
    %52 = arith.addf %50, %51 : vector<8x256xf32>
    %53 = vector.broadcast %3 : vector<1x256xf32> to vector<8x256xf32>
    %54 = arith.addf %52, %53 : vector<8x256xf32>
    %55 = arith.truncf %54 : vector<8x256xf32> to vector<8x256xbf16>
    %c4 = arith.constant 4 : index
    %c0_38 = arith.constant 0 : index
    %c0_39 = arith.constant 0 : index
    %56 = vector.load %arg11[%c4, %c0_38, %c0_39] : memref<8x8x256xbf16, #tpu.memory_space<vmem>>, vector<1x8x256xbf16>
    %57 = vector.shape_cast %56 : vector<1x8x256xbf16> to vector<8x256xbf16>
    %58 = vector.shape_cast %55 : vector<8x256xbf16> to vector<1x8x256xbf16>
    tpu.vector_store %arg11[%c4, %c0_38, %c0_39], %58 {strides = array<i32>} : memref<8x8x256xbf16, #tpu.memory_space<vmem>>, vector<1x8x256xbf16>,
    %c0_40 = arith.constant 0 : index
    %c80_41 = arith.constant 80 : index
    %59 = vector.load %arg1[%c0_40, %c80_41] : memref<8x128xbf16, #tpu.memory_space<vmem>>, vector<8x16xbf16>
    %c0_42 = arith.constant 0 : index
    %c32_43 = arith.constant 32 : index
    %60 = vector.load %arg1[%c0_42, %c32_43] : memref<8x128xbf16, #tpu.memory_space<vmem>>, vector<8x16xbf16>
    %cst_44 = arith.constant dense<0.000000e+00> : vector<8x256xf32>
    %61 = tpu.matmul %59, %0, %cst_44 {dimension_numbers = #tpu.dot_dimension_numbers<[1], [0], [0], [1], [0, 0, 1, 1], [], []>} : vector<8x16xbf16>, vector<16x256xbf16>, vector<8x256xf32> -> vector<8x256xf32>
    %cst_45 = arith.constant dense<0.000000e+00> : vector<8x256xf32>
    %62 = tpu.matmul %60, %1, %cst_45 {dimension_numbers = #tpu.dot_dimension_numbers<[1], [0], [0], [1], [0, 0, 1, 1], [], []>} : vector<8x16xbf16>, vector<16x256xbf16>, vector<8x256xf32> -> vector<8x256xf32>
    %63 = arith.addf %61, %62 : vector<8x256xf32>
    %64 = vector.broadcast %3 : vector<1x256xf32> to vector<8x256xf32>
    %65 = arith.addf %63, %64 : vector<8x256xf32>
    %66 = arith.truncf %65 : vector<8x256xf32> to vector<8x256xbf16>
    %c5 = arith.constant 5 : index
    %c0_46 = arith.constant 0 : index
    %c0_47 = arith.constant 0 : index
    %67 = vector.load %arg11[%c5, %c0_46, %c0_47] : memref<8x8x256xbf16, #tpu.memory_space<vmem>>, vector<1x8x256xbf16>
    %68 = vector.shape_cast %67 : vector<1x8x256xbf16> to vector<8x256xbf16>
    %69 = vector.shape_cast %66 : vector<8x256xbf16> to vector<1x8x256xbf16>
    tpu.vector_store %arg11[%c5, %c0_46, %c0_47], %69 {strides = array<i32>} : memref<8x8x256xbf16, #tpu.memory_space<vmem>>, vector<1x8x256xbf16>,
    %c0_48 = arith.constant 0 : index
    %c96_49 = arith.constant 96 : index
    %70 = vector.load %arg1[%c0_48, %c96_49] : memref<8x128xbf16, #tpu.memory_space<vmem>>, vector<8x16xbf16>
    %c0_50 = arith.constant 0 : index
    %c16_51 = arith.constant 16 : index
    %71 = vector.load %arg1[%c0_50, %c16_51] : memref<8x128xbf16, #tpu.memory_space<vmem>>, vector<8x16xbf16>
    %cst_52 = arith.constant dense<0.000000e+00> : vector<8x256xf32>
    %72 = tpu.matmul %70, %0, %cst_52 {dimension_numbers = #tpu.dot_dimension_numbers<[1], [0], [0], [1], [0, 0, 1, 1], [], []>} : vector<8x16xbf16>, vector<16x256xbf16>, vector<8x256xf32> -> vector<8x256xf32>
    %cst_53 = arith.constant dense<0.000000e+00> : vector<8x256xf32>
    %73 = tpu.matmul %71, %1, %cst_53 {dimension_numbers = #tpu.dot_dimension_numbers<[1], [0], [0], [1], [0, 0, 1, 1], [], []>} : vector<8x16xbf16>, vector<16x256xbf16>, vector<8x256xf32> -> vector<8x256xf32>
    %74 = arith.addf %72, %73 : vector<8x256xf32>
    %75 = vector.broadcast %3 : vector<1x256xf32> to vector<8x256xf32>
    %76 = arith.addf %74, %75 : vector<8x256xf32>
    %77 = arith.truncf %76 : vector<8x256xf32> to vector<8x256xbf16>
    %c6 = arith.constant 6 : index
    %c0_54 = arith.constant 0 : index
    %c0_55 = arith.constant 0 : index
    %78 = vector.load %arg11[%c6, %c0_54, %c0_55] : memref<8x8x256xbf16, #tpu.memory_space<vmem>>, vector<1x8x256xbf16>
    %79 = vector.shape_cast %78 : vector<1x8x256xbf16> to vector<8x256xbf16>
    %80 = vector.shape_cast %77 : vector<8x256xbf16> to vector<1x8x256xbf16>
    tpu.vector_store %arg11[%c6, %c0_54, %c0_55], %80 {strides = array<i32>} : memref<8x8x256xbf16, #tpu.memory_space<vmem>>, vector<1x8x256xbf16>,
    %c0_56 = arith.constant 0 : index
    %c112_57 = arith.constant 112 : index
    %81 = vector.load %arg1[%c0_56, %c112_57] : memref<8x128xbf16, #tpu.memory_space<vmem>>, vector<8x16xbf16>
    %c0_58 = arith.constant 0 : index
    %c0_59 = arith.constant 0 : index
    %82 = vector.load %arg1[%c0_58, %c0_59] : memref<8x128xbf16, #tpu.memory_space<vmem>>, vector<8x16xbf16>
    %cst_60 = arith.constant dense<0.000000e+00> : vector<8x256xf32>
    %83 = tpu.matmul %81, %0, %cst_60 {dimension_numbers = #tpu.dot_dimension_numbers<[1], [0], [0], [1], [0, 0, 1, 1], [], []>} : vector<8x16xbf16>, vector<16x256xbf16>, vector<8x256xf32> -> vector<8x256xf32>
    %cst_61 = arith.constant dense<0.000000e+00> : vector<8x256xf32>
    %84 = tpu.matmul %82, %1, %cst_61 {dimension_numbers = #tpu.dot_dimension_numbers<[1], [0], [0], [1], [0, 0, 1, 1], [], []>} : vector<8x16xbf16>, vector<16x256xbf16>, vector<8x256xf32> -> vector<8x256xf32>
    %85 = arith.addf %83, %84 : vector<8x256xf32>
    %86 = vector.broadcast %3 : vector<1x256xf32> to vector<8x256xf32>
    %87 = arith.addf %85, %86 : vector<8x256xf32>
    %88 = arith.truncf %87 : vector<8x256xf32> to vector<8x256xbf16>
    %c7 = arith.constant 7 : index
    %c0_62 = arith.constant 0 : index
    %c0_63 = arith.constant 0 : index
    %89 = vector.load %arg11[%c7, %c0_62, %c0_63] : memref<8x8x256xbf16, #tpu.memory_space<vmem>>, vector<1x8x256xbf16>
    %90 = vector.shape_cast %89 : vector<1x8x256xbf16> to vector<8x256xbf16>
    %91 = vector.shape_cast %88 : vector<8x256xbf16> to vector<1x8x256xbf16>
    tpu.vector_store %arg11[%c7, %c0_62, %c0_63], %91 {strides = array<i32>} : memref<8x8x256xbf16, #tpu.memory_space<vmem>>, vector<1x8x256xbf16>,
    %cst_64 = arith.constant 0.000000e+00 : f32
    %92 = vector.broadcast %cst_64 : f32 to vector<8x64xf32>
    %cst_65 = arith.constant 0.000000e+00 : f32
    %93 = vector.broadcast %cst_65 : f32 to vector<8x64xf32>
    %94 = arith.truncf %92 : vector<8x64xf32> to vector<8x64xbf16>
    %cst_66 = arith.constant dense<0.000000e+00> : vector<8x256xf32>
    %95 = tpu.matmul %94, %2, %cst_66 {dimension_numbers = #tpu.dot_dimension_numbers<[1], [0], [0], [1], [0, 0, 1, 1], [], []>} : vector<8x64xbf16>, vector<64x256xbf16>, vector<8x256xf32> -> vector<8x256xf32>
    %c0_67 = arith.constant 0 : index
    %c0_68 = arith.constant 0 : index
    %c0_69 = arith.constant 0 : index
    %96 = vector.load %arg11[%c0_67, %c0_68, %c0_69] : memref<8x8x256xbf16, #tpu.memory_space<vmem>>, vector<1x8x256xbf16>
    %97 = vector.shape_cast %96 : vector<1x8x256xbf16> to vector<8x256xbf16>
    %98 = arith.extf %97 : vector<8x256xbf16> to vector<8x256xf32>
    %99 = arith.addf %98, %95 : vector<8x256xf32>
    %100 = math.tanh %99 : vector<8x256xf32>
    %101 = vector.extract_strided_slice %100 {offsets = [0, 0], sizes = [8, 64], strides = [1, 1]} : vector<8x256xf32> to vector<8x64xf32>
    %cst_70 = arith.constant 5.000000e-01 : f32
    %102 = vector.broadcast %cst_70 : f32 to vector<8x64xf32>
    %103 = arith.mulf %102, %101 : vector<8x64xf32>
    %cst_71 = arith.constant 5.000000e-01 : f32
    %104 = vector.broadcast %cst_71 : f32 to vector<8x64xf32>
    %105 = arith.addf %103, %104 : vector<8x64xf32>
    %106 = vector.extract_strided_slice %100 {offsets = [0, 64], sizes = [8, 64], strides = [1, 1]} : vector<8x256xf32> to vector<8x64xf32>
    %cst_72 = arith.constant 5.000000e-01 : f32
    %107 = vector.broadcast %cst_72 : f32 to vector<8x64xf32>
    %108 = arith.mulf %107, %106 : vector<8x64xf32>
    %cst_73 = arith.constant 5.000000e-01 : f32
    %109 = vector.broadcast %cst_73 : f32 to vector<8x64xf32>
    %110 = arith.addf %108, %109 : vector<8x64xf32>
    %111 = vector.extract_strided_slice %100 {offsets = [0, 128], sizes = [8, 64], strides = [1, 1]} : vector<8x256xf32> to vector<8x64xf32>
    %cst_74 = arith.constant 5.000000e-01 : f32
    %112 = vector.broadcast %cst_74 : f32 to vector<8x64xf32>
    %113 = arith.mulf %112, %111 : vector<8x64xf32>
    %cst_75 = arith.constant 5.000000e-01 : f32
    %114 = vector.broadcast %cst_75 : f32 to vector<8x64xf32>
    %115 = arith.addf %113, %114 : vector<8x64xf32>
    %116 = vector.extract_strided_slice %100 {offsets = [0, 192], sizes = [8, 64], strides = [1, 1]} : vector<8x256xf32> to vector<8x64xf32>
    %117 = arith.mulf %110, %93 : vector<8x64xf32>
    %118 = arith.mulf %105, %116 : vector<8x64xf32>
    %119 = arith.addf %117, %118 : vector<8x64xf32>
    %120 = math.tanh %119 : vector<8x64xf32>
    %121 = arith.mulf %115, %120 : vector<8x64xf32>
    %122 = arith.truncf %121 : vector<8x64xf32> to vector<8x64xbf16>
    %cst_76 = arith.constant dense<0.000000e+00> : vector<8x256xf32>
    %123 = tpu.matmul %122, %2, %cst_76 {dimension_numbers = #tpu.dot_dimension_numbers<[1], [0], [0], [1], [0, 0, 1, 1], [], []>} : vector<8x64xbf16>, vector<64x256xbf16>, vector<8x256xf32> -> vector<8x256xf32>
    %c1_77 = arith.constant 1 : index
    %c0_78 = arith.constant 0 : index
    %c0_79 = arith.constant 0 : index
    %124 = vector.load %arg11[%c1_77, %c0_78, %c0_79] : memref<8x8x256xbf16, #tpu.memory_space<vmem>>, vector<1x8x256xbf16>
    %125 = vector.shape_cast %124 : vector<1x8x256xbf16> to vector<8x256xbf16>
    %126 = arith.extf %125 : vector<8x256xbf16> to vector<8x256xf32>
    %127 = arith.addf %126, %123 : vector<8x256xf32>
    %128 = math.tanh %127 : vector<8x256xf32>
    %129 = vector.extract_strided_slice %128 {offsets = [0, 0], sizes = [8, 64], strides = [1, 1]} : vector<8x256xf32> to vector<8x64xf32>
    %cst_80 = arith.constant 5.000000e-01 : f32
    %130 = vector.broadcast %cst_80 : f32 to vector<8x64xf32>
    %131 = arith.mulf %130, %129 : vector<8x64xf32>
    %cst_81 = arith.constant 5.000000e-01 : f32
    %132 = vector.broadcast %cst_81 : f32 to vector<8x64xf32>
    %133 = arith.addf %131, %132 : vector<8x64xf32>
    %134 = vector.extract_strided_slice %128 {offsets = [0, 64], sizes = [8, 64], strides = [1, 1]} : vector<8x256xf32> to vector<8x64xf32>
    %cst_82 = arith.constant 5.000000e-01 : f32
    %135 = vector.broadcast %cst_82 : f32 to vector<8x64xf32>
    %136 = arith.mulf %135, %134 : vector<8x64xf32>
    %cst_83 = arith.constant 5.000000e-01 : f32
    %137 = vector.broadcast %cst_83 : f32 to vector<8x64xf32>
    %138 = arith.addf %136, %137 : vector<8x64xf32>
    %139 = vector.extract_strided_slice %128 {offsets = [0, 128], sizes = [8, 64], strides = [1, 1]} : vector<8x256xf32> to vector<8x64xf32>
    %cst_84 = arith.constant 5.000000e-01 : f32
    %140 = vector.broadcast %cst_84 : f32 to vector<8x64xf32>
    %141 = arith.mulf %140, %139 : vector<8x64xf32>
    %cst_85 = arith.constant 5.000000e-01 : f32
    %142 = vector.broadcast %cst_85 : f32 to vector<8x64xf32>
    %143 = arith.addf %141, %142 : vector<8x64xf32>
    %144 = vector.extract_strided_slice %128 {offsets = [0, 192], sizes = [8, 64], strides = [1, 1]} : vector<8x256xf32> to vector<8x64xf32>
    %145 = arith.mulf %138, %119 : vector<8x64xf32>
    %146 = arith.mulf %133, %144 : vector<8x64xf32>
    %147 = arith.addf %145, %146 : vector<8x64xf32>
    %148 = math.tanh %147 : vector<8x64xf32>
    %149 = arith.mulf %143, %148 : vector<8x64xf32>
    %150 = arith.truncf %149 : vector<8x64xf32> to vector<8x64xbf16>
    %cst_86 = arith.constant dense<0.000000e+00> : vector<8x256xf32>
    %151 = tpu.matmul %150, %2, %cst_86 {dimension_numbers = #tpu.dot_dimension_numbers<[1], [0], [0], [1], [0, 0, 1, 1], [], []>} : vector<8x64xbf16>, vector<64x256xbf16>, vector<8x256xf32> -> vector<8x256xf32>
    %c2_87 = arith.constant 2 : index
    %c0_88 = arith.constant 0 : index
    %c0_89 = arith.constant 0 : index
    %152 = vector.load %arg11[%c2_87, %c0_88, %c0_89] : memref<8x8x256xbf16, #tpu.memory_space<vmem>>, vector<1x8x256xbf16>
    %153 = vector.shape_cast %152 : vector<1x8x256xbf16> to vector<8x256xbf16>
    %154 = arith.extf %153 : vector<8x256xbf16> to vector<8x256xf32>
    %155 = arith.addf %154, %151 : vector<8x256xf32>
    %156 = math.tanh %155 : vector<8x256xf32>
    %157 = vector.extract_strided_slice %156 {offsets = [0, 0], sizes = [8, 64], strides = [1, 1]} : vector<8x256xf32> to vector<8x64xf32>
    %cst_90 = arith.constant 5.000000e-01 : f32
    %158 = vector.broadcast %cst_90 : f32 to vector<8x64xf32>
    %159 = arith.mulf %158, %157 : vector<8x64xf32>
    %cst_91 = arith.constant 5.000000e-01 : f32
    %160 = vector.broadcast %cst_91 : f32 to vector<8x64xf32>
    %161 = arith.addf %159, %160 : vector<8x64xf32>
    %162 = vector.extract_strided_slice %156 {offsets = [0, 64], sizes = [8, 64], strides = [1, 1]} : vector<8x256xf32> to vector<8x64xf32>
    %cst_92 = arith.constant 5.000000e-01 : f32
    %163 = vector.broadcast %cst_92 : f32 to vector<8x64xf32>
    %164 = arith.mulf %163, %162 : vector<8x64xf32>
    %cst_93 = arith.constant 5.000000e-01 : f32
    %165 = vector.broadcast %cst_93 : f32 to vector<8x64xf32>
    %166 = arith.addf %164, %165 : vector<8x64xf32>
    %167 = vector.extract_strided_slice %156 {offsets = [0, 128], sizes = [8, 64], strides = [1, 1]} : vector<8x256xf32> to vector<8x64xf32>
    %cst_94 = arith.constant 5.000000e-01 : f32
    %168 = vector.broadcast %cst_94 : f32 to vector<8x64xf32>
    %169 = arith.mulf %168, %167 : vector<8x64xf32>
    %cst_95 = arith.constant 5.000000e-01 : f32
    %170 = vector.broadcast %cst_95 : f32 to vector<8x64xf32>
    %171 = arith.addf %169, %170 : vector<8x64xf32>
    %172 = vector.extract_strided_slice %156 {offsets = [0, 192], sizes = [8, 64], strides = [1, 1]} : vector<8x256xf32> to vector<8x64xf32>
    %173 = arith.mulf %166, %147 : vector<8x64xf32>
    %174 = arith.mulf %161, %172 : vector<8x64xf32>
    %175 = arith.addf %173, %174 : vector<8x64xf32>
    %176 = math.tanh %175 : vector<8x64xf32>
    %177 = arith.mulf %171, %176 : vector<8x64xf32>
    %178 = arith.truncf %177 : vector<8x64xf32> to vector<8x64xbf16>
    %cst_96 = arith.constant dense<0.000000e+00> : vector<8x256xf32>
    %179 = tpu.matmul %178, %2, %cst_96 {dimension_numbers = #tpu.dot_dimension_numbers<[1], [0], [0], [1], [0, 0, 1, 1], [], []>} : vector<8x64xbf16>, vector<64x256xbf16>, vector<8x256xf32> -> vector<8x256xf32>
    %c3_97 = arith.constant 3 : index
    %c0_98 = arith.constant 0 : index
    %c0_99 = arith.constant 0 : index
    %180 = vector.load %arg11[%c3_97, %c0_98, %c0_99] : memref<8x8x256xbf16, #tpu.memory_space<vmem>>, vector<1x8x256xbf16>
    %181 = vector.shape_cast %180 : vector<1x8x256xbf16> to vector<8x256xbf16>
    %182 = arith.extf %181 : vector<8x256xbf16> to vector<8x256xf32>
    %183 = arith.addf %182, %179 : vector<8x256xf32>
    %184 = math.tanh %183 : vector<8x256xf32>
    %185 = vector.extract_strided_slice %184 {offsets = [0, 0], sizes = [8, 64], strides = [1, 1]} : vector<8x256xf32> to vector<8x64xf32>
    %cst_100 = arith.constant 5.000000e-01 : f32
    %186 = vector.broadcast %cst_100 : f32 to vector<8x64xf32>
    %187 = arith.mulf %186, %185 : vector<8x64xf32>
    %cst_101 = arith.constant 5.000000e-01 : f32
    %188 = vector.broadcast %cst_101 : f32 to vector<8x64xf32>
    %189 = arith.addf %187, %188 : vector<8x64xf32>
    %190 = vector.extract_strided_slice %184 {offsets = [0, 64], sizes = [8, 64], strides = [1, 1]} : vector<8x256xf32> to vector<8x64xf32>
    %cst_102 = arith.constant 5.000000e-01 : f32
    %191 = vector.broadcast %cst_102 : f32 to vector<8x64xf32>
    %192 = arith.mulf %191, %190 : vector<8x64xf32>
    %cst_103 = arith.constant 5.000000e-01 : f32
    %193 = vector.broadcast %cst_103 : f32 to vector<8x64xf32>
    %194 = arith.addf %192, %193 : vector<8x64xf32>
    %195 = vector.extract_strided_slice %184 {offsets = [0, 128], sizes = [8, 64], strides = [1, 1]} : vector<8x256xf32> to vector<8x64xf32>
    %cst_104 = arith.constant 5.000000e-01 : f32
    %196 = vector.broadcast %cst_104 : f32 to vector<8x64xf32>
    %197 = arith.mulf %196, %195 : vector<8x64xf32>
    %cst_105 = arith.constant 5.000000e-01 : f32
    %198 = vector.broadcast %cst_105 : f32 to vector<8x64xf32>
    %199 = arith.addf %197, %198 : vector<8x64xf32>
    %200 = vector.extract_strided_slice %184 {offsets = [0, 192], sizes = [8, 64], strides = [1, 1]} : vector<8x256xf32> to vector<8x64xf32>
    %201 = arith.mulf %194, %175 : vector<8x64xf32>
    %202 = arith.mulf %189, %200 : vector<8x64xf32>
    %203 = arith.addf %201, %202 : vector<8x64xf32>
    %204 = math.tanh %203 : vector<8x64xf32>
    %205 = arith.mulf %199, %204 : vector<8x64xf32>
    %206 = arith.truncf %205 : vector<8x64xf32> to vector<8x64xbf16>
    %cst_106 = arith.constant dense<0.000000e+00> : vector<8x256xf32>
    %207 = tpu.matmul %206, %2, %cst_106 {dimension_numbers = #tpu.dot_dimension_numbers<[1], [0], [0], [1], [0, 0, 1, 1], [], []>} : vector<8x64xbf16>, vector<64x256xbf16>, vector<8x256xf32> -> vector<8x256xf32>
    %c4_107 = arith.constant 4 : index
    %c0_108 = arith.constant 0 : index
    %c0_109 = arith.constant 0 : index
    %208 = vector.load %arg11[%c4_107, %c0_108, %c0_109] : memref<8x8x256xbf16, #tpu.memory_space<vmem>>, vector<1x8x256xbf16>
    %209 = vector.shape_cast %208 : vector<1x8x256xbf16> to vector<8x256xbf16>
    %210 = arith.extf %209 : vector<8x256xbf16> to vector<8x256xf32>
    %211 = arith.addf %210, %207 : vector<8x256xf32>
    %212 = math.tanh %211 : vector<8x256xf32>
    %213 = vector.extract_strided_slice %212 {offsets = [0, 0], sizes = [8, 64], strides = [1, 1]} : vector<8x256xf32> to vector<8x64xf32>
    %cst_110 = arith.constant 5.000000e-01 : f32
    %214 = vector.broadcast %cst_110 : f32 to vector<8x64xf32>
    %215 = arith.mulf %214, %213 : vector<8x64xf32>
    %cst_111 = arith.constant 5.000000e-01 : f32
    %216 = vector.broadcast %cst_111 : f32 to vector<8x64xf32>
    %217 = arith.addf %215, %216 : vector<8x64xf32>
    %218 = vector.extract_strided_slice %212 {offsets = [0, 64], sizes = [8, 64], strides = [1, 1]} : vector<8x256xf32> to vector<8x64xf32>
    %cst_112 = arith.constant 5.000000e-01 : f32
    %219 = vector.broadcast %cst_112 : f32 to vector<8x64xf32>
    %220 = arith.mulf %219, %218 : vector<8x64xf32>
    %cst_113 = arith.constant 5.000000e-01 : f32
    %221 = vector.broadcast %cst_113 : f32 to vector<8x64xf32>
    %222 = arith.addf %220, %221 : vector<8x64xf32>
    %223 = vector.extract_strided_slice %212 {offsets = [0, 128], sizes = [8, 64], strides = [1, 1]} : vector<8x256xf32> to vector<8x64xf32>
    %cst_114 = arith.constant 5.000000e-01 : f32
    %224 = vector.broadcast %cst_114 : f32 to vector<8x64xf32>
    %225 = arith.mulf %224, %223 : vector<8x64xf32>
    %cst_115 = arith.constant 5.000000e-01 : f32
    %226 = vector.broadcast %cst_115 : f32 to vector<8x64xf32>
    %227 = arith.addf %225, %226 : vector<8x64xf32>
    %228 = vector.extract_strided_slice %212 {offsets = [0, 192], sizes = [8, 64], strides = [1, 1]} : vector<8x256xf32> to vector<8x64xf32>
    %229 = arith.mulf %222, %203 : vector<8x64xf32>
    %230 = arith.mulf %217, %228 : vector<8x64xf32>
    %231 = arith.addf %229, %230 : vector<8x64xf32>
    %232 = math.tanh %231 : vector<8x64xf32>
    %233 = arith.mulf %227, %232 : vector<8x64xf32>
    %234 = arith.truncf %233 : vector<8x64xf32> to vector<8x64xbf16>
    %cst_116 = arith.constant dense<0.000000e+00> : vector<8x256xf32>
    %235 = tpu.matmul %234, %2, %cst_116 {dimension_numbers = #tpu.dot_dimension_numbers<[1], [0], [0], [1], [0, 0, 1, 1], [], []>} : vector<8x64xbf16>, vector<64x256xbf16>, vector<8x256xf32> -> vector<8x256xf32>
    %c5_117 = arith.constant 5 : index
    %c0_118 = arith.constant 0 : index
    %c0_119 = arith.constant 0 : index
    %236 = vector.load %arg11[%c5_117, %c0_118, %c0_119] : memref<8x8x256xbf16, #tpu.memory_space<vmem>>, vector<1x8x256xbf16>
    %237 = vector.shape_cast %236 : vector<1x8x256xbf16> to vector<8x256xbf16>
    %238 = arith.extf %237 : vector<8x256xbf16> to vector<8x256xf32>
    %239 = arith.addf %238, %235 : vector<8x256xf32>
    %240 = math.tanh %239 : vector<8x256xf32>
    %241 = vector.extract_strided_slice %240 {offsets = [0, 0], sizes = [8, 64], strides = [1, 1]} : vector<8x256xf32> to vector<8x64xf32>
    %cst_120 = arith.constant 5.000000e-01 : f32
    %242 = vector.broadcast %cst_120 : f32 to vector<8x64xf32>
    %243 = arith.mulf %242, %241 : vector<8x64xf32>
    %cst_121 = arith.constant 5.000000e-01 : f32
    %244 = vector.broadcast %cst_121 : f32 to vector<8x64xf32>
    %245 = arith.addf %243, %244 : vector<8x64xf32>
    %246 = vector.extract_strided_slice %240 {offsets = [0, 64], sizes = [8, 64], strides = [1, 1]} : vector<8x256xf32> to vector<8x64xf32>
    %cst_122 = arith.constant 5.000000e-01 : f32
    %247 = vector.broadcast %cst_122 : f32 to vector<8x64xf32>
    %248 = arith.mulf %247, %246 : vector<8x64xf32>
    %cst_123 = arith.constant 5.000000e-01 : f32
    %249 = vector.broadcast %cst_123 : f32 to vector<8x64xf32>
    %250 = arith.addf %248, %249 : vector<8x64xf32>
    %251 = vector.extract_strided_slice %240 {offsets = [0, 128], sizes = [8, 64], strides = [1, 1]} : vector<8x256xf32> to vector<8x64xf32>
    %cst_124 = arith.constant 5.000000e-01 : f32
    %252 = vector.broadcast %cst_124 : f32 to vector<8x64xf32>
    %253 = arith.mulf %252, %251 : vector<8x64xf32>
    %cst_125 = arith.constant 5.000000e-01 : f32
    %254 = vector.broadcast %cst_125 : f32 to vector<8x64xf32>
    %255 = arith.addf %253, %254 : vector<8x64xf32>
    %256 = vector.extract_strided_slice %240 {offsets = [0, 192], sizes = [8, 64], strides = [1, 1]} : vector<8x256xf32> to vector<8x64xf32>
    %257 = arith.mulf %250, %231 : vector<8x64xf32>
    %258 = arith.mulf %245, %256 : vector<8x64xf32>
    %259 = arith.addf %257, %258 : vector<8x64xf32>
    %260 = math.tanh %259 : vector<8x64xf32>
    %261 = arith.mulf %255, %260 : vector<8x64xf32>
    %262 = arith.truncf %261 : vector<8x64xf32> to vector<8x64xbf16>
    %cst_126 = arith.constant dense<0.000000e+00> : vector<8x256xf32>
    %263 = tpu.matmul %262, %2, %cst_126 {dimension_numbers = #tpu.dot_dimension_numbers<[1], [0], [0], [1], [0, 0, 1, 1], [], []>} : vector<8x64xbf16>, vector<64x256xbf16>, vector<8x256xf32> -> vector<8x256xf32>
    %c6_127 = arith.constant 6 : index
    %c0_128 = arith.constant 0 : index
    %c0_129 = arith.constant 0 : index
    %264 = vector.load %arg11[%c6_127, %c0_128, %c0_129] : memref<8x8x256xbf16, #tpu.memory_space<vmem>>, vector<1x8x256xbf16>
    %265 = vector.shape_cast %264 : vector<1x8x256xbf16> to vector<8x256xbf16>
    %266 = arith.extf %265 : vector<8x256xbf16> to vector<8x256xf32>
    %267 = arith.addf %266, %263 : vector<8x256xf32>
    %268 = math.tanh %267 : vector<8x256xf32>
    %269 = vector.extract_strided_slice %268 {offsets = [0, 0], sizes = [8, 64], strides = [1, 1]} : vector<8x256xf32> to vector<8x64xf32>
    %cst_130 = arith.constant 5.000000e-01 : f32
    %270 = vector.broadcast %cst_130 : f32 to vector<8x64xf32>
    %271 = arith.mulf %270, %269 : vector<8x64xf32>
    %cst_131 = arith.constant 5.000000e-01 : f32
    %272 = vector.broadcast %cst_131 : f32 to vector<8x64xf32>
    %273 = arith.addf %271, %272 : vector<8x64xf32>
    %274 = vector.extract_strided_slice %268 {offsets = [0, 64], sizes = [8, 64], strides = [1, 1]} : vector<8x256xf32> to vector<8x64xf32>
    %cst_132 = arith.constant 5.000000e-01 : f32
    %275 = vector.broadcast %cst_132 : f32 to vector<8x64xf32>
    %276 = arith.mulf %275, %274 : vector<8x64xf32>
    %cst_133 = arith.constant 5.000000e-01 : f32
    %277 = vector.broadcast %cst_133 : f32 to vector<8x64xf32>
    %278 = arith.addf %276, %277 : vector<8x64xf32>
    %279 = vector.extract_strided_slice %268 {offsets = [0, 128], sizes = [8, 64], strides = [1, 1]} : vector<8x256xf32> to vector<8x64xf32>
    %cst_134 = arith.constant 5.000000e-01 : f32
    %280 = vector.broadcast %cst_134 : f32 to vector<8x64xf32>
    %281 = arith.mulf %280, %279 : vector<8x64xf32>
    %cst_135 = arith.constant 5.000000e-01 : f32
    %282 = vector.broadcast %cst_135 : f32 to vector<8x64xf32>
    %283 = arith.addf %281, %282 : vector<8x64xf32>
    %284 = vector.extract_strided_slice %268 {offsets = [0, 192], sizes = [8, 64], strides = [1, 1]} : vector<8x256xf32> to vector<8x64xf32>
    %285 = arith.mulf %278, %259 : vector<8x64xf32>
    %286 = arith.mulf %273, %284 : vector<8x64xf32>
    %287 = arith.addf %285, %286 : vector<8x64xf32>
    %288 = math.tanh %287 : vector<8x64xf32>
    %289 = arith.mulf %283, %288 : vector<8x64xf32>
    %290 = arith.truncf %289 : vector<8x64xf32> to vector<8x64xbf16>
    %cst_136 = arith.constant dense<0.000000e+00> : vector<8x256xf32>
    %291 = tpu.matmul %290, %2, %cst_136 {dimension_numbers = #tpu.dot_dimension_numbers<[1], [0], [0], [1], [0, 0, 1, 1], [], []>} : vector<8x64xbf16>, vector<64x256xbf16>, vector<8x256xf32> -> vector<8x256xf32>
    %c7_137 = arith.constant 7 : index
    %c0_138 = arith.constant 0 : index
    %c0_139 = arith.constant 0 : index
    %292 = vector.load %arg11[%c7_137, %c0_138, %c0_139] : memref<8x8x256xbf16, #tpu.memory_space<vmem>>, vector<1x8x256xbf16>
    %293 = vector.shape_cast %292 : vector<1x8x256xbf16> to vector<8x256xbf16>
    %294 = arith.extf %293 : vector<8x256xbf16> to vector<8x256xf32>
    %295 = arith.addf %294, %291 : vector<8x256xf32>
    %296 = math.tanh %295 : vector<8x256xf32>
    %297 = vector.extract_strided_slice %296 {offsets = [0, 0], sizes = [8, 64], strides = [1, 1]} : vector<8x256xf32> to vector<8x64xf32>
    %cst_140 = arith.constant 5.000000e-01 : f32
    %298 = vector.broadcast %cst_140 : f32 to vector<8x64xf32>
    %299 = arith.mulf %298, %297 : vector<8x64xf32>
    %cst_141 = arith.constant 5.000000e-01 : f32
    %300 = vector.broadcast %cst_141 : f32 to vector<8x64xf32>
    %301 = arith.addf %299, %300 : vector<8x64xf32>
    %302 = vector.extract_strided_slice %296 {offsets = [0, 64], sizes = [8, 64], strides = [1, 1]} : vector<8x256xf32> to vector<8x64xf32>
    %cst_142 = arith.constant 5.000000e-01 : f32
    %303 = vector.broadcast %cst_142 : f32 to vector<8x64xf32>
    %304 = arith.mulf %303, %302 : vector<8x64xf32>
    %cst_143 = arith.constant 5.000000e-01 : f32
    %305 = vector.broadcast %cst_143 : f32 to vector<8x64xf32>
    %306 = arith.addf %304, %305 : vector<8x64xf32>
    %307 = vector.extract_strided_slice %296 {offsets = [0, 128], sizes = [8, 64], strides = [1, 1]} : vector<8x256xf32> to vector<8x64xf32>
    %cst_144 = arith.constant 5.000000e-01 : f32
    %308 = vector.broadcast %cst_144 : f32 to vector<8x64xf32>
    %309 = arith.mulf %308, %307 : vector<8x64xf32>
    %cst_145 = arith.constant 5.000000e-01 : f32
    %310 = vector.broadcast %cst_145 : f32 to vector<8x64xf32>
    %311 = arith.addf %309, %310 : vector<8x64xf32>
    %312 = vector.extract_strided_slice %296 {offsets = [0, 192], sizes = [8, 64], strides = [1, 1]} : vector<8x256xf32> to vector<8x64xf32>
    %313 = arith.mulf %306, %287 : vector<8x64xf32>
    %314 = arith.mulf %301, %312 : vector<8x64xf32>
    %315 = arith.addf %313, %314 : vector<8x64xf32>
    %316 = math.tanh %315 : vector<8x64xf32>
    %317 = arith.mulf %311, %316 : vector<8x64xf32>
    %318 = arith.truncf %317 : vector<8x64xf32> to vector<8x64xbf16>
    %c0_146 = arith.constant 0 : index
    %c0_147 = arith.constant 0 : index
    %319 = vector.load %arg6[%c0_146, %c0_147] : memref<64x128xbf16, #tpu.memory_space<vmem>>, vector<64x128xbf16>
    %cst_148 = arith.constant dense<0.000000e+00> : vector<8x128xf32>
    %320 = tpu.matmul %318, %319, %cst_148 {dimension_numbers = #tpu.dot_dimension_numbers<[1], [0], [0], [1], [0, 0, 1, 1], [], []>} : vector<8x64xbf16>, vector<64x128xbf16>, vector<8x128xf32> -> vector<8x128xf32>
    %c0_149 = arith.constant 0 : index
    %c0_150 = arith.constant 0 : index
    %321 = vector.load %arg7[%c0_149, %c0_150] : memref<1x128xf32, #tpu.memory_space<vmem>>, vector<1x128xf32>
    %322 = vector.broadcast %321 : vector<1x128xf32> to vector<8x128xf32>
    %323 = arith.addf %320, %322 : vector<8x128xf32>
    %cst_151 = arith.constant 0.000000e+00 : f32
    %324 = vector.broadcast %cst_151 : f32 to vector<8x128xf32>
    %325 = arith.maximumf %323, %324 : vector<8x128xf32>
    %326 = arith.truncf %325 : vector<8x128xf32> to vector<8x128xbf16>
    %c0_152 = arith.constant 0 : index
    %c0_153 = arith.constant 0 : index
    %327 = vector.load %arg8[%c0_152, %c0_153] : memref<128x128xbf16, #tpu.memory_space<vmem>>, vector<128x128xbf16>
    %cst_154 = arith.constant dense<0.000000e+00> : vector<8x128xf32>
    %328 = tpu.matmul %326, %327, %cst_154 {dimension_numbers = #tpu.dot_dimension_numbers<[1], [0], [0], [1], [0, 0, 1, 1], [], []>} : vector<8x128xbf16>, vector<128x128xbf16>, vector<8x128xf32> -> vector<8x128xf32>
    %c0_155 = arith.constant 0 : index
    %c0_156 = arith.constant 0 : index
    %329 = vector.load %arg9[%c0_155, %c0_156] : memref<1x128xf32, #tpu.memory_space<vmem>>, vector<1x128xf32>
    %330 = vector.broadcast %329 : vector<1x128xf32> to vector<8x128xf32>
    %331 = arith.addf %328, %330 : vector<8x128xf32>
    %c0_157 = arith.constant 0 : index
    %c0_158 = arith.constant 0 : index
    %332 = vector.load %arg10[%c0_157, %c0_158] : memref<8x128xf32, #tpu.memory_space<vmem>>, vector<8x128xf32>
    tpu.vector_store %arg10[%c0_157, %c0_158], %331 {strides = array<i32>} : memref<8x128xf32, #tpu.memory_space<vmem>>, vector<8x128xf32>,
    return
  }
  func.func @transform_0(%arg0: i32) -> (i32, i32) {
    %c0_i32 = arith.constant 0 : i32
    %c0_i32_0 = arith.constant 0 : i32
    return %arg0, %c0_i32 : i32, i32
  }
  func.func @transform_1(%arg0: i32) -> (i32, i32) {
    %c0_i32 = arith.constant 0 : i32
    %c0_i32_0 = arith.constant 0 : i32
    %c0_i32_1 = arith.constant 0 : i32
    return %c0_i32, %c0_i32_0 : i32, i32
  }
  func.func @transform_2(%arg0: i32) -> (i32, i32) {
    %c0_i32 = arith.constant 0 : i32
    %c0_i32_0 = arith.constant 0 : i32
    %c0_i32_1 = arith.constant 0 : i32
    return %c0_i32, %c0_i32_0 : i32, i32
  }
  func.func @transform_3(%arg0: i32) -> (i32, i32) {
    %c0_i32 = arith.constant 0 : i32
    %c0_i32_0 = arith.constant 0 : i32
    %c0_i32_1 = arith.constant 0 : i32
    return %c0_i32, %c0_i32_0 : i32, i32
  }
  func.func @transform_4(%arg0: i32) -> (i32, i32) {
    %c0_i32 = arith.constant 0 : i32
    %c0_i32_0 = arith.constant 0 : i32
    %c0_i32_1 = arith.constant 0 : i32
    return %c0_i32, %c0_i32_0 : i32, i32
  }
  func.func @transform_5(%arg0: i32) -> (i32, i32) {
    %c0_i32 = arith.constant 0 : i32
    %c0_i32_0 = arith.constant 0 : i32
    %c0_i32_1 = arith.constant 0 : i32
    return %c0_i32, %c0_i32_0 : i32, i32
  }
  func.func @transform_6(%arg0: i32) -> (i32, i32) {
    %c0_i32 = arith.constant 0 : i32
    %c0_i32_0 = arith.constant 0 : i32
    %c0_i32_1 = arith.constant 0 : i32
    return %c0_i32, %c0_i32_0 : i32, i32
  }
  func.func @transform_7(%arg0: i32) -> (i32, i32) {
    %c0_i32 = arith.constant 0 : i32
    %c0_i32_0 = arith.constant 0 : i32
    %c0_i32_1 = arith.constant 0 : i32
    return %c0_i32, %c0_i32_0 : i32, i32
  }
  func.func @transform_8(%arg0: i32) -> (i32, i32) {
    %c0_i32 = arith.constant 0 : i32
    %c0_i32_0 = arith.constant 0 : i32
    %c0_i32_1 = arith.constant 0 : i32
    return %c0_i32, %c0_i32_0 : i32, i32
  }
  func.func @transform_9(%arg0: i32) -> (i32, i32) {
    %c0_i32 = arith.constant 0 : i32
    %c0_i32_0 = arith.constant 0 : i32
    return %arg0, %c0_i32 : i32, i32
  }
}

</mosaic_0001>

<bundles_post_ra>
// kernel: tpu_custom_call.1
= control target key start
LH: loop header
LB: loop body
LE: loop exit
PB: predicated region body
PF: predicated region fallthrough
CT: control target
= control target key end

     0   :  { %14 = vsyncpa [#allocation4], 0  ;;  %s2737_s0 = inlined_call_operand.hbm [shape: bf16[8,128], index: 0, kind: input, shape index: {}]   ;;  %s2738_s1 = inlined_call_operand.hbm [shape: bf16[16,256], index: 1, kind: input, shape index: {}]   ;;  %s2739_s2 = inlined_call_operand.hbm [shape: bf16[16,256], index: 2, kind: input, shape index: {}]   ;;  %s2740_s3 = inlined_call_operand.hbm [shape: bf16[64,256], index: 3, kind: input, shape index: {}]   ;;  %s2741_s4 = inlined_call_operand.vmem [shape: f32[1,256], index: 4, kind: input, shape index: {}]   ;;  %s2742_s5 = inlined_call_operand.hbm [shape: bf16[64,128], index: 5, kind: input, shape index: {}]   ;;  %s2743_s6 = inlined_call_operand.vmem [shape: f32[1,128], index: 6, kind: input, shape index: {}]   ;;  %s2744_s7 = inlined_call_operand.hbm [shape: bf16[128,128], index: 7, kind: input, shape index: {}]   ;;  %s2745_s8 = inlined_call_operand.vmem [shape: f32[1,128], index: 8, kind: input, shape index: {}]   ;;  %s2746_s9 = inlined_call_operand.hbm [shape: f32[8,128], index: 9, kind: output, shape index: {}]  }
   0x1   :  { %15 = vsyncpa [#allocation7], 0 }
   0x2   :  { %16 = vsyncpa [#allocation10], 0 }
   0x3   :  { %17 = vsyncpa [#allocation13], 0 }
   0x4   :  { %18 = vsyncpa [#allocation5], 0  ;;  %s2247_s30 = smov [#allocation6]   ;;  %s2083_s13 = scalar_lea.hbm %s2738_s1, 256 }
   0x5   :  { %s34_s10 = sshll.u32 %s2247_s30, 4  ;;  %p2084_p0 = scmp.ne.s32.totalorder %s2738_s1, %s2083_s13  ;;  %s35_s10 = int_to_ptr.vmem [resolvable:$true] %s34_s10 }
   0x6   :  { %p2087_p1 = scmp.lt.u32.totalorder %s2083_s13, %s2738_s1 }
   0x8   :  { %p2089_p2 = pnand %p2087_p1, %p2084_p0 }
   0xa   :  { %2092 = shalt.err (!%p2089_p2)
}
   0xb   :  { %s2093_s18 = scalar_lea.vmem %s35_s10, 256  ;;  %p2098_p4 = scmp.lt.s32.totalorder %s35_s10, %s35_s10 }
   0xc   :  { %p2094_p3 = scmp.ne.s32.totalorder %s35_s10, %s2093_s18  ;;  %p2099_p5 = scmp.lt.s32.totalorder %s2093_s18, %s2093_s18 }
   0xe   :  { %p2100_p6 = por %p2099_p5, %p2098_p4 }
  0x10   :  { %p2101_p7 = pnand %p2100_p6, %p2094_p3 }
  0x12   :  { %2104 = shalt.err (!%p2101_p7)
}
  0x13   :  { %s2248_s19 = smov 128   ;;  %s2249_s20 = smov 8  }
  0x14   :  { %40 = dma.hbm_to_vmem [thread:$0]  %s2738_s1, 256, %s35_s10, [#allocation7], %s2248_s19, %s2248_s19, %s2249_s20  }
  0x15   :  { %s2250_s23 = smov [#allocation9]   ;;  %s2251_s25 = smov [#allocation3]  }
  0x16   :  { %s58_s24 = sshll.u32 %s2250_s23, 4  ;;  %s25_s26 = sshll.u32 %s2251_s25, 4  ;;  %s59_s24 = int_to_ptr.vmem [resolvable:$true] %s58_s24  ;;  %s26_s26 = int_to_ptr.vmem [resolvable:$true] %s25_s26 }
  0x17   :  { %s2105_s29 = scalar_lea.hbm %s2740_s3, 1024 }
  0x18   :  { %p2106_p8 = scmp.ne.s32.totalorder %s2740_s3, %s2105_s29  ;;  %p2109_p9 = scmp.lt.u32.totalorder %s2105_s29, %s2740_s3 }
  0x1a   :  { %p2111_p10 = pnand %p2109_p9, %p2106_p8 }
  0x1c   :  { %2114 = shalt.err (!%p2111_p10)
}
  0x1d   :  { %s2115_s1 = scalar_lea.vmem %s59_s24, 1024  ;;  %p2120_p12 = scmp.lt.s32.totalorder %s59_s24, %s59_s24 }
  0x1e   :  { %p2116_p11 = scmp.ne.s32.totalorder %s59_s24, %s2115_s1  ;;  %p2121_p13 = scmp.lt.s32.totalorder %s2115_s1, %s2115_s1 }
  0x20   :  { %p2122_p0 = por %p2121_p13, %p2120_p12 }
  0x22   :  { %p2123_p1 = pnand %p2122_p0, %p2116_p11 }
  0x24   :  { %2126 = shalt.err (!%p2123_p1)
}
  0x25   :  { %64 = dma.hbm_to_vmem [thread:$0]  %s2740_s3, 1024, %s59_s24, [#allocation10], %s2248_s19, %s2248_s19, %s2249_s20  }
  0x26   :  { %s2127_s17 = scalar_lea.hbm %s2737_s0, 64 }
  0x27   :  { %p2128_p2 = scmp.ne.s32.totalorder %s2737_s0, %s2127_s17  ;;  %p2131_p3 = scmp.lt.u32.totalorder %s2127_s17, %s2737_s0 }
  0x29   :  { %p2133_p4 = pnand %p2131_p3, %p2128_p2 }
  0x2b   :  { %2136 = shalt.err (!%p2133_p4)
}
  0x2c   :  { %s2137_s25 = scalar_lea.vmem %s26_s26, 64  ;;  %p2142_p6 = scmp.lt.s32.totalorder %s26_s26, %s26_s26 }
  0x2d   :  { %p2138_p5 = scmp.ne.s32.totalorder %s26_s26, %s2137_s25  ;;  %p2143_p7 = scmp.lt.s32.totalorder %s2137_s25, %s2137_s25 }
  0x2f   :  { %p2144_p8 = por %p2143_p7, %p2142_p6 }
  0x31   :  { %p2145_p9 = pnand %p2144_p8, %p2138_p5 }
  0x33   :  { %2148 = shalt.err (!%p2145_p9)
}
  0x34   :  { %28 = dma.hbm_to_vmem [thread:$0]  %s2737_s0, 64, %s26_s26, [#allocation4]  }
  0x35   :  { %s2252_s27 = smov [#allocation8]   ;;  %s2253_s29 = smov [#allocation11]  }
  0x36   :  { %s46_s28 = sshll.u32 %s2252_s27, 4  ;;  %s72_s30 = sshll.u32 %s2253_s29, 4  ;;  %s47_s28 = int_to_ptr.vmem [resolvable:$true] %s46_s28  ;;  %s73_s30 = int_to_ptr.vmem [resolvable:$true] %s72_s30 }
  0x37   :  { %s2149_s13 = scalar_lea.hbm %s2739_s2, 256 }
  0x38   :  { %p2150_p10 = scmp.ne.s32.totalorder %s2739_s2, %s2149_s13  ;;  %p2153_p11 = scmp.lt.u32.totalorder %s2149_s13, %s2739_s2 }
  0x3a   :  { %p2155_p12 = pnand %p2153_p11, %p2150_p10 }
  0x3c   :  { %2158 = shalt.err (!%p2155_p12)
}
  0x3d   :  { %s2159_s0 = scalar_lea.vmem %s47_s28, 256  ;;  %p2164_p0 = scmp.lt.s32.totalorder %s47_s28, %s47_s28 }
  0x3e   :  { %p2160_p13 = scmp.ne.s32.totalorder %s47_s28, %s2159_s0  ;;  %p2165_p1 = scmp.lt.s32.totalorder %s2159_s0, %s2159_s0 }
  0x40   :  { %p2166_p2 = por %p2165_p1, %p2164_p0 }
  0x42   :  { %p2167_p3 = pnand %p2166_p2, %p2160_p13 }
  0x44   :  { %2170 = shalt.err (!%p2167_p3)
}
  0x45   :  { %52 = dma.hbm_to_vmem [thread:$0]  %s2739_s2, 256, %s47_s28, [#allocation7], %s2248_s19, %s2248_s19, %s2249_s20  }
  0x46   :  { %s2171_s21 = scalar_lea.hbm %s2742_s5, 512 }
  0x47   :  { %p2172_p4 = scmp.ne.s32.totalorder %s2742_s5, %s2171_s21  ;;  %p2175_p5 = scmp.lt.u32.totalorder %s2171_s21, %s2742_s5 }
  0x49   :  { %p2177_p6 = pnand %p2175_p5, %p2172_p4 }
  0x4b   :  { %2180 = shalt.err (!%p2177_p6)
}
  0x4c   :  { %s2181_s24 = scalar_lea.vmem %s73_s30, 512  ;;  %p2186_p8 = scmp.lt.s32.totalorder %s73_s30, %s73_s30 }
  0x4d   :  { %p2182_p7 = scmp.ne.s32.totalorder %s73_s30, %s2181_s24  ;;  %p2187_p9 = scmp.lt.s32.totalorder %s2181_s24, %s2181_s24 }
  0x4f   :  { %p2188_p10 = por %p2187_p9, %p2186_p8 }
  0x51   :  { %p2189_p11 = pnand %p2188_p10, %p2182_p7 }
  0x53   :  { %2192 = shalt.err (!%p2189_p11)
}
  0x54   :  { %s2254_s2 = smov 64   ;;  %s2255_s19 = smov 4  }
  0x55   :  { %78 = dma.hbm_to_vmem [thread:$0]  %s2742_s5, 512, %s73_s30, [#allocation10], %s2254_s2, %s2254_s2, %s2255_s19  }
  0x56   :  { %s2256_s28 = smov [#allocation12]   ;;  %s2193_s13 = scalar_lea.hbm %s2744_s7, 1024 }
  0x57   :  { %s86_s29 = sshll.u32 %s2256_s28, 4  ;;  %p2194_p12 = scmp.ne.s32.totalorder %s2744_s7, %s2193_s13  ;;  %s87_s29 = int_to_ptr.vmem [resolvable:$true] %s86_s29 }
  0x58   :  { %p2197_p13 = scmp.lt.u32.totalorder %s2193_s13, %s2744_s7 }
  0x5a   :  { %p2199_p0 = pnand %p2197_p13, %p2194_p12 }
  0x5c   :  { %2202 = shalt.err (!%p2199_p0)
}
  0x5d   :  { %s2203_s0 = scalar_lea.vmem %s87_s29, 1024  ;;  %p2208_p2 = scmp.lt.s32.totalorder %s87_s29, %s87_s29 }
  0x5e   :  { %p2204_p1 = scmp.ne.s32.totalorder %s87_s29, %s2203_s0  ;;  %p2209_p3 = scmp.lt.s32.totalorder %s2203_s0, %s2203_s0 }
  0x60   :  { %p2210_p4 = por %p2209_p3, %p2208_p2 }
  0x62   :  { %p2211_p5 = pnand %p2210_p4, %p2204_p1 }
  0x64   :  { %2214 = shalt.err (!%p2211_p5)
}
  0x65   :  { %92 = dma.hbm_to_vmem [thread:$0]  %s2744_s7, 1024, %s87_s29, [#allocation13], %s2254_s2, %s2254_s2, %s2255_s19  }
  0x66   :  { %2237 = dma.done.wait [#allocation4], 64  }
  0x67   :  { %2238 = vsyncadd [#allocation4], 4294967232 }
  0x68   :  { %2239 = dma.done.wait [#allocation7], 512  }
  0x69   :  { %2240 = vsyncadd [#allocation7], 4294966784 }
  0x6a   :  { %2241 = dma.done.wait [#allocation10], 1536  }
  0x6b   :  { %2242 = vsyncadd [#allocation10], 4294965760 }
  0x6c   :  { %2243 = dma.done.wait [#allocation13], 1024  }
  0x6d   :  { %2244 = vsyncadd [#allocation13], 4294966272  ;;  %v2257_v0 = vmov 0   ;;  %v127_v1 = vld [vmem:[#allocation3] sm:$0xf]  ;;  %s2258_s7 = smov 16   ;;  %v243_v29 = vlaneseq }
  0x6e   :  { %179 = vmatprep.mubr.bf16.mxu0 %v2257_v0  ;;  %351 = vmatprep.mubr.bf16.mxu1 %v2257_v0  ;;  %v1857_v2 = vcombine.low %v127_v1, %v127_v1  ;;  %v2404_v3 = vld [vmem:[#allocation3] ss:$0 sps:$4 sm:$0xff]   ;;  %s2259_s26 = smov 48   ;;  %v2006_v9 = vld [vmem:[#allocation8] ss:$8 sps:$4 sm:$0xff]   ;;  %s2260_s16 = smov 32  }
  0x6f   :  { %v2406_v4 = vld [vmem:[#allocation3] ss:$0 sps:$4 sm:$0xff]   ;;  %376 = vrot.lane.b32.xlu1 %v2404_v3, %s2259_s26  ;;  %v2417_v10 = vld [vmem:[#allocation6 + $0x4] ss:$8 sps:$4 sm:$0xff]   ;;  %v2419_v11 = vld [vmem:[#allocation6] ss:$8 sps:$4 sm:$0xff]  }
  0x70   :  { %131 = vrot.lane.b32.xlu0 %v1857_v2, %s2258_s7  ;;  %v2411_v5 = vld [vmem:[#allocation3] ss:$0 sps:$4 sm:$0xff]   ;;  %319 = vmatprep.subr.bf16.mxu1 %v2417_v10  ;;  %s2261_s17 = smov 80   ;;  %s2262_s18 = smov 96   ;;  %vm143_vm0 = vcmask 130048   ;;  %v244_v30 = vshrl.u32 %v243_v29, 7 }
  0x71   :  { %v2413_v6 = vld [vmem:[#allocation3] ss:$0 sps:$4 sm:$0xff]   ;;  %320 = vmatpush1.bf16.msra.mxu1 %v2419_v11  ;;  %s2263_s21 = smov 112   ;;  %v2452_v20 = vld [vmem:[#allocation9 + $0x4] ss:$8 sps:$4 sm:$0xff]   ;;  %vm1058_vm1 = vcmask 523264  }
  0x72   :  { %v2415_v7 = vld [vmem:[#allocation3] ss:$0 sps:$4 sm:$0xff]   ;;  %427 = vmatprep.subr.bf16.mxu1 %v2417_v10  ;;  %v2459_v22 = vld [vmem:[#allocation9] ss:$8 sps:$4 sm:$0xff]   ;;  %v2466_v24 = vld [vmem:[#allocation9 + $0x10] ss:$8 sps:$4 sm:$0xff]  }
  0x73   :  { %v2004_v8 = vld [vmem:[#allocation8 + $0x4] ss:$8 sps:$4 sm:$0xff]   ;;  %484 = vrot.lane.b32.xlu1 %v2411_v5, %s2254_s2  ;;  %v2470_v25 = vld [vmem:[#allocation9 + $0x24] ss:$8 sps:$4 sm:$0xff]   ;;  %v2473_v26 = vld [vmem:[#allocation9 + $0x20] ss:$8 sps:$4 sm:$0xff]  }
  0x74   :  { %268 = vrot.lane.b32.xlu0 %v2406_v4, %s2260_s16  ;;  %147 = vmatprep.subr.bf16.mxu0 %v2004_v8  ;;  %v2426_v12 = vld [vmem:[#allocation3] ss:$0 sps:$4 sm:$0xff]   ;;  %v2479_v28 = vld [vmem:[#allocation9 + $0x30] ss:$8 sps:$4 sm:$0xff]   ;;  %v245_v35 = vsub.s32 0, %v244_v30  ;;  %v249_v37 = vsub.s32 1, %v244_v30 }
  0x75   :  { %148 = vmatpush1.bf16.msra.mxu0 %v2006_v9  ;;  %v2457_v21 = vld [vmem:[#allocation3] sm:$0xf]  ;;  %vm2265_vm2 = vmmov 0  }
  0x76   :  { %201 = vmatprep.subr.bf16.mxu0 %v2417_v10  ;;  %v2461_v23 = vld [vmem:[#allocation9 + $0x14] ss:$8 sps:$4 sm:$0xff]  }
  0x77   :  { %700 = vrot.lane.b32.xlu1 %v2415_v7, %s2262_s18  ;;  %v2476_v27 = vld [vmem:[#allocation9 + $0x34] ss:$8 sps:$4 sm:$0xff]  }
  0x78   :  { %592 = vrot.lane.b32.xlu0 %v2413_v6, %s2261_s17  ;;  %v126_v36 = vld [vmem:[%s2741_s4] sm:$0x3] }
  0x79   :  { %v2497_v38 = vrot.slane %v126_v36, %v245_v35  ;;  %v2499_v40 = vrot.slane %v126_v36, %v249_v37 }
  0x7c   :  { %808 = vrot.lane.b32.xlu0 %v2426_v12, %s2263_s21 }
  0xe1   :  { %v377_v15 = vpop.permute.xlu1 %376 }
  0xe2   :  { %v132_v13 = vpop.permute.xlu0 %131 }
  0xe3   :  { %1860 = vmatmul.mubr.msk.bf16.vlgmr.msra.gmra.mrb[0].mxu0 %vm143_vm0, %v132_v13 }
  0xe4   :  { %202 = vmatpush1.bf16.msra.mxu0 %v2419_v11  ;;  %233 = vmatprep.mubr.bf16.mxu0 %v2257_v0 }
  0xe5   :  { %273 = vmatprep.subr.bf16.mxu0 %v2004_v8  ;;  %v485_v16 = vpop.permute.xlu1 %484 }
  0xe6   :  { %v269_v14 = vpop.permute.xlu0 %268 }
  0xe9   :  { %v701_v18 = vpop.permute.xlu1 %700 }
  0xea   :  { %v593_v17 = vpop.permute.xlu0 %592 }
  0xeb   :  { %1863 = vmatmul.mubr.msk.bf16.vlgmr.msra.gmra.mrb[4].mxu0 %vm143_vm0, %v127_v1 }
  0xec   :  { %274 = vmatpush1.bf16.msra.mxu0 %v2006_v9  ;;  %305 = vmatprep.mubr.bf16.mxu0 %v2257_v0 }
  0xed   :  { %381 = vmatprep.subr.bf16.mxu0 %v2004_v8 }
  0xee   :  { %v809_v19 = vpop.permute.xlu0 %808 }
  0xf3   :  { %1866 = vmatmul.mubr.msk.bf16.vlgmr.msra.gmra.mrb[8].mxu0 %vm143_vm0, %v269_v14 }
  0xf4   :  { %382 = vmatpush1.bf16.msra.mxu0 %v2006_v9  ;;  %413 = vmatprep.mubr.bf16.mxu0 %v2257_v0 }
  0xf5   :  { %489 = vmatprep.subr.bf16.mxu0 %v2004_v8 }
  0xfb   :  { %1870 = vmatmul.mubr.msk.bf16.vlgmr.msra.gmra.mrb[12].mxu0 %vm143_vm0, %v377_v15 }
  0xfc   :  { %490 = vmatpush1.bf16.msra.mxu0 %v2006_v9  ;;  %521 = vmatprep.mubr.bf16.mxu0 %v2257_v0 }
  0xfd   :  { %597 = vmatprep.subr.bf16.mxu0 %v2004_v8 }
 0x103   :  { %1874 = vmatmul.mubr.msk.bf16.vlgmr.msra.gmra.mrb[16].mxu0 %vm143_vm0, %v485_v16 }
 0x104   :  { %598 = vmatpush1.bf16.msra.mxu0 %v2006_v9  ;;  %629 = vmatprep.mubr.bf16.mxu0 %v2257_v0 }
 0x105   :  { %705 = vmatprep.subr.bf16.mxu0 %v2004_v8 }
 0x10b   :  { %1878 = vmatmul.mubr.msk.bf16.vlgmr.msra.gmra.mrb[20].mxu0 %vm143_vm0, %v593_v17 }
 0x10c   :  { %706 = vmatpush1.bf16.msra.mxu0 %v2006_v9  ;;  %737 = vmatprep.mubr.bf16.mxu0 %v2257_v0 }
 0x10d   :  { %813 = vmatprep.subr.bf16.mxu0 %v2004_v8 }
 0x113   :  { %1882 = vmatmul.mubr.msk.bf16.vlgmr.msra.gmra.mrb[24].mxu0 %vm143_vm0, %v701_v18 }
 0x114   :  { %814 = vmatpush1.bf16.msra.mxu0 %v2006_v9  ;;  %845 = vmatprep.mubr.bf16.mxu0 %v2257_v0 }
 0x115   :  { %916 = vmatprep.subr.bf16.mxu0 %v2004_v8 }
 0x11b   :  { %1886 = vmatmul.mubr.msk.bf16.vlgmr.msra.gmra.mrb[28].mxu0 %vm143_vm0, %v809_v19 }
 0x11c   :  { %917 = vmatpush1.bf16.msra.mxu0 %v2006_v9  ;;  %948 = vmatprep.mubr.bf16.mxu0 %v2257_v0 }
 0x11d   :  { %1062 = vmatprep.subr.bf16.mxu0 %v2452_v20 }
 0x123   :  { %1889 = vmatmul.mubr.msk.bf16.vlgmr.msra.gmra.mrb[32].mxu0 %vm143_vm0, %v2457_v21 }
 0x124   :  { %1063 = vmatpush1.bf16.msra.mxu0 %v2459_v22  ;;  %1094 = vmatprep.mubr.bf16.mxu0 %v2257_v0 }
 0x125   :  { %1064 = vmatprep.subr.bf16.mxu0 %v2461_v23 }
 0x128   :  { %1065 = vmatpush1.bf16.msra.mxu0 %v2466_v24 }
 0x129   :  { %1066 = vmatprep.subr.bf16.mxu0 %v2470_v25 }
 0x12c   :  { %1067 = vmatpush1.bf16.msra.mxu0 %v2473_v26 }
 0x12d   :  { %1068 = vmatprep.subr.bf16.mxu0 %v2476_v27 }
 0x130   :  { %1069 = vmatpush1.bf16.msra.mxu0 %v2479_v28 }
 0x131   :  { %1208 = vmatprep.subr.bf16.mxu0 %v2452_v20 }
 0x133   :  { %1095 = vmatmul.mubr.bf16.vlgmr.msra.gmra.mrb[36].mxu0 %v2257_v0 }
 0x134   :  { %1209 = vmatpush1.bf16.msra.mxu0 %v2459_v22  ;;  %1240 = vmatprep.mubr.bf16.mxu0 %v2257_v0 }
 0x135   :  { %1210 = vmatprep.subr.bf16.mxu0 %v2461_v23 }
 0x138   :  { %1211 = vmatpush1.bf16.msra.mxu0 %v2466_v24 }
 0x139   :  { %1212 = vmatprep.subr.bf16.mxu0 %v2470_v25 }
 0x13c   :  { %1213 = vmatpush1.bf16.msra.mxu0 %v2473_v26 }
 0x13d   :  { %1214 = vmatprep.subr.bf16.mxu0 %v2476_v27 }
 0x140   :  { %1215 = vmatpush1.bf16.msra.mxu0 %v2479_v28 }
 0x141   :  { %1354 = vmatprep.subr.bf16.mxu0 %v2452_v20 }
 0x1b6   :  { %v181_v31 = vpop.f32.mrb[0].mxu0 }
 0x1b7   :  { %v183_v32 = vpop.f32.mrb[1].mxu0 }
 0x1b8   :  { %v185_v33 = vpop.f32.mrb[2].mxu0 }
 0x1b9   :  { %v186_v34 = vpop.f32.mrb[3].mxu0 }
 0x1be   :  { %v235_v39 = vpop.f32.mrb[4].mxu0 }
 0x1bf   :  { %v236_v41 = vadd.f32 %v235_v39, %v181_v31  ;;  %v237_v42 = vpop.f32.mrb[5].mxu0 }
 0x1c0   :  { %v238_v43 = vadd.f32 %v237_v42, %v183_v32  ;;  %v239_v44 = vpop.f32.mrb[6].mxu0  ;;  %v1890_v42 = vcombine.low %v2457_v21, %v2457_v21 }
 0x1c1   :  { %v253_v45 = vadd.f32 %v2497_v38, %v236_v41  ;;  %v240_v46 = vpop.f32.mrb[7].mxu0 }
 0x1c2   :  { %v254_v47 = vadd.f32 %v2499_v40, %v238_v43 }
 0x1c4   :  { %v1923_v48 = vpack.c.bf16 %v254_v47, %v253_v45 }
 0x1c6   :  { %v2503_v49 = vpop.f32.mrb[8].mxu0  ;;  %v1104_v31 = vunpack.c.l.bf16 %v1923_v48  ;;  %v1105_v33 = vunpack.c.h.bf16 %v1923_v48 }
 0x1c7   :  { %v2505_v50 = vpop.f32.mrb[9].mxu0 }
 0x1c8   :  { %v311_v51 = vpop.f32.mrb[10].mxu0 }
 0x1c9   :  { %v312_v52 = vpop.f32.mrb[11].mxu0 }
 0x1ce   :  { %v2507_v53 = vpop.f32.mrb[12].mxu0 }
 0x1cf   :  { %v2509_v54 = vpop.f32.mrb[13].mxu0 }
 0x1d0   :  { %v419_v55 = vpop.f32.mrb[14].mxu0 }
 0x1d1   :  { %v420_v56 = vpop.f32.mrb[15].mxu0 }
 0x1d6   :  { %v2511_v57 = vpop.f32.mrb[16].mxu0 }
 0x1d7   :  { %v2513_v58 = vpop.f32.mrb[17].mxu0 }
 0x1d8   :  { %v527_v59 = vpop.f32.mrb[18].mxu0 }
 0x1d9   :  { %v528_v60 = vpop.f32.mrb[19].mxu0 }
 0x1de   :  { %v2515_v61 = vpop.f32.mrb[20].mxu0 }
 0x1df   :  { %v2517_v62 = vpop.f32.mrb[21].mxu0 }
 0x1e0   :  { %v635_v63 = vpop.f32.mrb[22].mxu0 }
 0x1e1   :  { %v636_v1 = vpop.f32.mrb[23].mxu0 }
 0x1e6   :  { %v2519_v2 = vpop.f32.mrb[24].mxu0 }
 0x1e7   :  { %v2521_v8 = vpop.f32.mrb[25].mxu0 }
 0x1e8   :  { %v743_v9 = vpop.f32.mrb[26].mxu0 }
 0x1e9   :  { %v744_v13 = vpop.f32.mrb[27].mxu0 }
 0x1ee   :  { %v2523_v14 = vpop.f32.mrb[28].mxu0 }
 0x1ef   :  { %v2525_v15 = vpop.f32.mrb[29].mxu0 }
 0x1f0   :  { %v851_v16 = vpop.f32.mrb[30].mxu0 }
 0x1f1   :  { %v852_v17 = vpop.f32.mrb[31].mxu0 }
 0x1f6   :  { %v2527_v18 = vpop.f32.mrb[32].mxu0 }
 0x1f7   :  { %v2529_v19 = vpop.f32.mrb[33].mxu0 }
 0x1f8   :  { %v954_v29 = vpop.f32.mrb[34].mxu0 }
 0x1f9   :  { %v955_v30 = vpop.f32.mrb[35].mxu0 }
 0x206   :  { %v1096_v32 = vpop.f32.mrb[36].mxu0 }
 0x207   :  { %v1106_v34 = vadd.f32 %v1104_v31, %v1096_v32  ;;  %v1098_v35 = vpop.f32.mrb[37].mxu0 }
 0x208   :  { %v1107_v36 = vadd.f32 %v1105_v33, %v1098_v35  ;;  %v1100_v37 = vpop.f32.mrb[38].mxu0 }
 0x209   :  { %v1101_v39 = vpop.f32.mrb[39].mxu0 }
 0x20a   :  { %2035 = vtanh.f32 %v1107_v36 }
 0x20b   :  { %2037 = vtanh.f32 %v1106_v34 }
 0x214   :  { %v2531_v41 = vpop.eup %2035 }
 0x215   :  { %1116 = vrot.lane.b32.xlu1 %v2531_v41, %s2254_s2  ;;  %v2038_v43 = vpop.eup %2037  ;;  %v1112_v16 = vmul.f32 0.5, %v2531_v41 }
 0x216   :  { %v1110_v44 = vmul.f32 0.5, %v2038_v43 }
 0x217   :  { %v1113_v17 = vadd.f32 0.5, %v1112_v16 }
 0x218   :  { %v1111_v45 = vadd.f32 0.5, %v1110_v44 }
 0x219   :  { %314 = vrot.lane.b32.xlu1 %v2406_v4, %s2263_s21 }
 0x21d   :  { %530 = vrot.lane.b32.xlu1 %v2411_v5, %s2261_s17  ;;  %v1114_v5 = vmul.f32 0.0, %v1111_v45 }
 0x221   :  { %746 = vrot.lane.b32.xlu1 %v2415_v7, %s2259_s26 }
 0x225   :  { %960 = vrot.lane.b32.xlu1 %v1890_v42, %s2258_s7 }
 0x287   :  { %v1117_v46 = vpop.permute.xlu1 %1116 }
 0x288   :  { %v1119_v47 = vmul.f32 %v1117_v46, %v1111_v45 }
 0x28a   :  { %1121 = vrot.lane.b32.xlu0 %v1119_v47, %s2254_s2 }
 0x28b   :  { %v315_v4 = vpop.permute.xlu1 %314 }
 0x28c   :  { %1867 = vmatmul.mubr.msk.bf16.vlgmr.msra.gmra.mrb[0].mxu1 %vm143_vm0, %v315_v4 }
 0x28d   :  { %428 = vmatpush1.bf16.msra.mxu1 %v2419_v11  ;;  %459 = vmatprep.mubr.bf16.mxu1 %v2257_v0 }
 0x28e   :  { %422 = vrot.lane.b32.xlu0 %v2404_v3, %s2262_s18  ;;  %535 = vmatprep.subr.bf16.mxu1 %v2417_v10 }
 0x28f   :  { %v531_v3 = vpop.permute.xlu1 %530 }
 0x292   :  { %638 = vrot.lane.b32.xlu0 %v2413_v6, %s2254_s2 }
 0x293   :  { %v747_v51 = vpop.permute.xlu1 %746 }
 0x296   :  { %854 = vrot.lane.b32.xlu0 %v2426_v12, %s2260_s16 }
 0x297   :  { %v961_v55 = vpop.permute.xlu1 %960 }
 0x2fc   :  { %v1122_v7 = vpop.permute.xlu0 %1121 }
 0x2fd   :  { %v2555_v21 = vadd.f32 %v1122_v7, %v1114_v5 }
 0x2ff   :  { %2039 = vtanh.f32 %v2555_v21 }
 0x300   :  { %v423_v48 = vpop.permute.xlu0 %422 }
 0x301   :  { %1871 = vmatmul.mubr.msk.bf16.vlgmr.msra.gmra.mrb[4].mxu1 %vm143_vm0, %v423_v48 }
 0x302   :  { %536 = vmatpush1.bf16.msra.mxu1 %v2419_v11  ;;  %567 = vmatprep.mubr.bf16.mxu1 %v2257_v0 }
 0x303   :  { %643 = vmatprep.subr.bf16.mxu1 %v2417_v10 }
 0x304   :  { %v639_v12 = vpop.permute.xlu0 %638 }
 0x308   :  { %v855_v52 = vpop.permute.xlu0 %854 }
 0x309   :  { %v2040_v6 = vpop.eup %2039  ;;  %1875 = vmatmul.mubr.msk.bf16.vlgmr.msra.gmra.mrb[8].mxu1 %vm143_vm0, %v531_v3 }
 0x30a   :  { %1127 = vrot.lane.b32.xlu0 %v2040_v6, %s2254_s2  ;;  %644 = vmatpush1.bf16.msra.mxu1 %v2419_v11 }
 0x30b   :  { %675 = vmatprep.mubr.bf16.mxu1 %v2257_v0  ;;  %751 = vmatprep.subr.bf16.mxu1 %v2417_v10 }
 0x311   :  { %1879 = vmatmul.mubr.msk.bf16.vlgmr.msra.gmra.mrb[12].mxu1 %vm143_vm0, %v639_v12 }
 0x312   :  { %752 = vmatpush1.bf16.msra.mxu1 %v2419_v11  ;;  %783 = vmatprep.mubr.bf16.mxu1 %v2257_v0 }
 0x313   :  { %859 = vmatprep.subr.bf16.mxu1 %v2417_v10 }
 0x319   :  { %1883 = vmatmul.mubr.msk.bf16.vlgmr.msra.gmra.mrb[16].mxu1 %vm143_vm0, %v747_v51 }
 0x31a   :  { %860 = vmatpush1.bf16.msra.mxu1 %v2419_v11  ;;  %891 = vmatprep.mubr.bf16.mxu1 %v2257_v0 }
 0x31b   :  { %965 = vmatprep.subr.bf16.mxu1 %v2417_v10 }
 0x321   :  { %1887 = vmatmul.mubr.msk.bf16.vlgmr.msra.gmra.mrb[20].mxu1 %vm143_vm0, %v855_v52 }
 0x322   :  { %966 = vmatpush1.bf16.msra.mxu1 %v2419_v11  ;;  %997 = vmatprep.mubr.bf16.mxu1 %v2257_v0 }
 0x323   :  { %1135 = vmatprep.subr.bf16.mxu1 %v2452_v20 }
 0x329   :  { %1891 = vmatmul.mubr.msk.bf16.vlgmr.msra.gmra.mrb[24].mxu1 %vm143_vm0, %v961_v55 }
 0x32a   :  { %1136 = vmatpush1.bf16.msra.mxu1 %v2459_v22  ;;  %1167 = vmatprep.mubr.bf16.mxu1 %v2257_v0 }
 0x32b   :  { %1137 = vmatprep.subr.bf16.mxu1 %v2461_v23 }
 0x32e   :  { %1138 = vmatpush1.bf16.msra.mxu1 %v2466_v24 }
 0x32f   :  { %1139 = vmatprep.subr.bf16.mxu1 %v2470_v25 }
 0x332   :  { %1140 = vmatpush1.bf16.msra.mxu1 %v2473_v26 }
 0x333   :  { %1141 = vmatprep.subr.bf16.mxu1 %v2476_v27 }
 0x336   :  { %1142 = vmatpush1.bf16.msra.mxu1 %v2479_v28 }
 0x337   :  { %1281 = vmatprep.subr.bf16.mxu1 %v2452_v20 }
 0x35f   :  { %v353_v10 = vpop.f32.mrb[0].mxu1 }
 0x360   :  { %v354_v11 = vadd.f32 %v353_v10, %v2503_v49  ;;  %v355_v56 = vpop.f32.mrb[1].mxu1 }
 0x361   :  { %v356_v59 = vadd.f32 %v355_v56, %v2505_v50  ;;  %v357_v60 = vpop.f32.mrb[2].mxu1 }
 0x362   :  { %v360_v63 = vadd.f32 %v354_v11, %v2497_v38  ;;  %v358_v1 = vpop.f32.mrb[3].mxu1 }
 0x363   :  { %v361_v9 = vadd.f32 %v356_v59, %v2499_v40 }
 0x365   :  { %v2593_v13 = vpack.c.bf16 %v361_v9, %v360_v63 }
 0x37c   :  { %v1128_v29 = vpop.permute.xlu0 %1127 }
 0x37d   :  { %v1130_v30 = vmul.f32 %v1128_v29, %v1113_v17 }
 0x37f   :  { %v1131_v31 = vpack.c.bf16 %v1130_v30, %v1130_v30 }
 0x381   :  { %1901 = vmatmul.mubr.msk.bf16.vlgmr.msra.gmra.mrb[28].mxu1 %vm1058_vm1, %v1131_v31 }
 0x382   :  { %1282 = vmatpush1.bf16.msra.mxu1 %v2459_v22  ;;  %1313 = vmatprep.mubr.bf16.mxu1 %v2257_v0 }
 0x383   :  { %1283 = vmatprep.subr.bf16.mxu1 %v2461_v23 }
 0x386   :  { %1284 = vmatpush1.bf16.msra.mxu1 %v2466_v24 }
 0x387   :  { %1285 = vmatprep.subr.bf16.mxu1 %v2470_v25 }
 0x38a   :  { %1286 = vmatpush1.bf16.msra.mxu1 %v2473_v26 }
 0x38b   :  { %1287 = vmatprep.subr.bf16.mxu1 %v2476_v27 }
 0x38e   :  { %1288 = vmatpush1.bf16.msra.mxu1 %v2479_v28 }
 0x38f   :  { %1427 = vmatprep.subr.bf16.mxu1 %v2452_v20 }
 0x3d4   :  { %v461_v49 = vpop.f32.mrb[4].mxu1 }
 0x3d5   :  { %v462_v50 = vadd.f32 %v461_v49, %v2507_v53  ;;  %v463_v32 = vpop.f32.mrb[5].mxu1 }
 0x3d6   :  { %v464_v33 = vadd.f32 %v463_v32, %v2509_v54  ;;  %v465_v34 = vpop.f32.mrb[6].mxu1 }
 0x3d7   :  { %v468_v35 = vadd.f32 %v462_v50, %v2497_v38  ;;  %v466_v36 = vpop.f32.mrb[7].mxu1 }
 0x3d8   :  { %v469_v37 = vadd.f32 %v464_v33, %v2499_v40 }
 0x3da   :  { %v2610_v39 = vpack.c.bf16 %v469_v37, %v468_v35  ;;  %v1177_v35 = vunpack.c.l.bf16 %v2593_v13  ;;  %v1178_v37 = vunpack.c.h.bf16 %v2593_v13 }
 0x3dc   :  { %v569_v41 = vpop.f32.mrb[8].mxu1 }
 0x3dd   :  { %v570_v42 = vadd.f32 %v569_v41, %v2511_v57  ;;  %v571_v43 = vpop.f32.mrb[9].mxu1 }
 0x3de   :  { %v572_v44 = vadd.f32 %v571_v43, %v2513_v58  ;;  %v573_v45 = vpop.f32.mrb[10].mxu1 }
 0x3df   :  { %v576_v53 = vadd.f32 %v570_v42, %v2497_v38  ;;  %v574_v46 = vpop.f32.mrb[11].mxu1 }
 0x3e0   :  { %v577_v54 = vadd.f32 %v572_v44, %v2499_v40 }
 0x3e2   :  { %v2616_v47 = vpack.c.bf16 %v577_v54, %v576_v53 }
 0x3e4   :  { %v677_v4 = vpop.f32.mrb[12].mxu1 }
 0x3e5   :  { %v678_v5 = vadd.f32 %v677_v4, %v2515_v61  ;;  %v679_v7 = vpop.f32.mrb[13].mxu1 }
 0x3e6   :  { %v680_v48 = vadd.f32 %v679_v7, %v2517_v62  ;;  %v681_v3 = vpop.f32.mrb[14].mxu1 }
 0x3e7   :  { %v684_v57 = vadd.f32 %v678_v5, %v2497_v38  ;;  %v682_v6 = vpop.f32.mrb[15].mxu1 }
 0x3e8   :  { %v685_v58 = vadd.f32 %v680_v48, %v2499_v40 }
 0x3ea   :  { %v2622_v12 = vpack.c.bf16 %v685_v58, %v684_v57 }
 0x3ec   :  { %v785_v51 = vpop.f32.mrb[16].mxu1 }
 0x3ed   :  { %v786_v52 = vadd.f32 %v785_v51, %v2519_v2  ;;  %v787_v55 = vpop.f32.mrb[17].mxu1  ;;  %v1251_v51 = vunpack.c.h.bf16 %v2610_v39 }
 0x3ee   :  { %v788_v10 = vadd.f32 %v787_v55, %v2521_v8  ;;  %v789_v11 = vpop.f32.mrb[18].mxu1 }
 0x3ef   :  { %v792_v61 = vadd.f32 %v786_v52, %v2497_v38  ;;  %v790_v56 = vpop.f32.mrb[19].mxu1 }
 0x3f0   :  { %v793_v62 = vadd.f32 %v788_v10, %v2499_v40 }
 0x3f2   :  { %v2628_v59 = vpack.c.bf16 %v793_v62, %v792_v61 }
 0x3f4   :  { %v893_v60 = vpop.f32.mrb[20].mxu1 }
 0x3f5   :  { %v894_v63 = vadd.f32 %v893_v60, %v2523_v14  ;;  %v895_v1 = vpop.f32.mrb[21].mxu1 }
 0x3f6   :  { %v896_v9 = vadd.f32 %v895_v1, %v2525_v15  ;;  %v897_v16 = vpop.f32.mrb[22].mxu1 }
 0x3f7   :  { %v900_v2 = vadd.f32 %v894_v63, %v2497_v38  ;;  %v898_v17 = vpop.f32.mrb[23].mxu1 }
 0x3f8   :  { %v901_v8 = vadd.f32 %v896_v9, %v2499_v40 }
 0x3fa   :  { %v2634_v29 = vpack.c.bf16 %v901_v8, %v900_v2 }
 0x3fc   :  { %v999_v30 = vpop.f32.mrb[24].mxu1 }
 0x3fd   :  { %v1000_v31 = vadd.f32 %v999_v30, %v2527_v18  ;;  %v1001_v49 = vpop.f32.mrb[25].mxu1 }
 0x3fe   :  { %v1002_v50 = vadd.f32 %v1001_v49, %v2529_v19  ;;  %v1003_v32 = vpop.f32.mrb[26].mxu1 }
 0x3ff   :  { %v1006_v14 = vadd.f32 %v1000_v31, %v2497_v38  ;;  %v1004_v33 = vpop.f32.mrb[27].mxu1  ;;  %v1323_v32 = vunpack.c.l.bf16 %v2616_v47 }
 0x400   :  { %v1007_v15 = vadd.f32 %v1002_v50, %v2499_v40  ;;  %v1324_v33 = vunpack.c.h.bf16 %v2616_v47 }
 0x402   :  { %v2640_v34 = vpack.c.bf16 %v1007_v15, %v1006_v14 }
 0x454   :  { %v1169_v36 = vpop.f32.mrb[28].mxu1 }
 0x455   :  { %v1179_v41 = vadd.f32 %v1177_v35, %v1169_v36  ;;  %v1171_v42 = vpop.f32.mrb[29].mxu1 }
 0x456   :  { %v1180_v43 = vadd.f32 %v1178_v37, %v1171_v42  ;;  %v1173_v18 = vpop.f32.mrb[30].mxu1 }
 0x457   :  { %v1174_v44 = vpop.f32.mrb[31].mxu1 }
 0x458   :  { %2041 = vtanh.f32 %v1180_v43 }
 0x459   :  { %2043 = vtanh.f32 %v1179_v41 }
 0x462   :  { %v2042_v19 = vpop.eup %2041 }
 0x463   :  { %1189 = vrot.lane.b32.xlu1 %v2042_v19, %s2254_s2  ;;  %v2044_v38 = vpop.eup %2043  ;;  %v1185_v7 = vmul.f32 0.5, %v2042_v19 }
 0x464   :  { %v1183_v45 = vmul.f32 0.5, %v2044_v38 }
 0x465   :  { %v1186_v48 = vadd.f32 0.5, %v1185_v7 }
 0x466   :  { %v1184_v40 = vadd.f32 0.5, %v1183_v45 }
 0x468   :  { %v1187_v54 = vmul.f32 %v1184_v40, %v2555_v21  ;;  %v1250_v21 = vunpack.c.l.bf16 %v2610_v39 }
 0x4d5   :  { %v1190_v53 = vpop.permute.xlu1 %1189 }
 0x4d6   :  { %v1192_v46 = vmul.f32 %v1190_v53, %v1184_v40 }
 0x4d8   :  { %1194 = vrot.lane.b32.xlu0 %v1192_v46, %s2254_s2 }
 0x54a   :  { %v1195_v13 = vpop.permute.xlu0 %1194 }
 0x54b   :  { %v1197_v4 = vadd.f32 %v1195_v13, %v1187_v54 }
 0x54d   :  { %2045 = vtanh.f32 %v1197_v4 }
 0x557   :  { %v2046_v5 = vpop.eup %2045 }
 0x558   :  { %1200 = vrot.lane.b32.xlu1 %v2046_v5, %s2254_s2  ;;  %v1396_v5 = vunpack.c.l.bf16 %v2622_v12 }
 0x5ca   :  { %v1201_v3 = vpop.permute.xlu1 %1200 }
 0x5cb   :  { %v1203_v57 = vmul.f32 %v1201_v3, %v1186_v48  ;;  %v1397_v48 = vunpack.c.h.bf16 %v2622_v12 }
 0x5cd   :  { %v1204_v6 = vpack.c.bf16 %v1203_v57, %v1203_v57 }
 0x5cf   :  { %1902 = vmatmul.mubr.msk.bf16.vlgmr.msra.gmra.mrb[40].mxu0 %vm1058_vm1, %v1204_v6 }
 0x5d0   :  { %1355 = vmatpush1.bf16.msra.mxu0 %v2459_v22  ;;  %1386 = vmatprep.mubr.bf16.mxu0 %v2257_v0 }
 0x5d1   :  { %1356 = vmatprep.subr.bf16.mxu0 %v2461_v23 }
 0x5d4   :  { %1357 = vmatpush1.bf16.msra.mxu0 %v2466_v24 }
 0x5d5   :  { %1358 = vmatprep.subr.bf16.mxu0 %v2470_v25 }
 0x5d8   :  { %1359 = vmatpush1.bf16.msra.mxu0 %v2473_v26 }
 0x5d9   :  { %1360 = vmatprep.subr.bf16.mxu0 %v2476_v27 }
 0x5dc   :  { %1361 = vmatpush1.bf16.msra.mxu0 %v2479_v28 }
 0x5dd   :  { %1500 = vmatprep.subr.bf16.mxu0 %v2452_v20 }
 0x6a2   :  { %v1242_v58 = vpop.f32.mrb[40].mxu0 }
 0x6a3   :  { %v1252_v52 = vadd.f32 %v1250_v21, %v1242_v58  ;;  %v1244_v55 = vpop.f32.mrb[41].mxu0 }
 0x6a4   :  { %v1253_v10 = vadd.f32 %v1251_v51, %v1244_v55  ;;  %v1246_v11 = vpop.f32.mrb[42].mxu0 }
 0x6a5   :  { %v1247_v61 = vpop.f32.mrb[43].mxu0 }
 0x6a6   :  { %2047 = vtanh.f32 %v1253_v10 }
 0x6a7   :  { %2049 = vtanh.f32 %v1252_v52 }
 0x6b0   :  { %v2048_v56 = vpop.eup %2047 }
 0x6b1   :  { %1262 = vrot.lane.b32.xlu0 %v2048_v56, %s2254_s2  ;;  %v2050_v62 = vpop.eup %2049  ;;  %v1258_v8 = vmul.f32 0.5, %v2048_v56 }
 0x6b2   :  { %v1256_v60 = vmul.f32 0.5, %v2050_v62 }
 0x6b3   :  { %v1259_v30 = vadd.f32 0.5, %v1258_v8  ;;  %v1470_v8 = vunpack.c.h.bf16 %v2628_v59 }
 0x6b4   :  { %v1257_v63 = vadd.f32 0.5, %v1256_v60 }
 0x6b6   :  { %v1260_v16 = vmul.f32 %v1257_v63, %v1197_v4 }
 0x723   :  { %v1263_v1 = vpop.permute.xlu0 %1262 }
 0x724   :  { %v1265_v9 = vmul.f32 %v1263_v1, %v1257_v63 }
 0x726   :  { %1267 = vrot.lane.b32.xlu1 %v1265_v9, %s2254_s2 }
 0x798   :  { %v1268_v2 = vpop.permute.xlu1 %1267 }
 0x799   :  { %v1270_v39 = vadd.f32 %v1268_v2, %v1260_v16 }
 0x79b   :  { %2051 = vtanh.f32 %v1270_v39 }
 0x7a5   :  { %v2052_v17 = vpop.eup %2051 }
 0x7a6   :  { %1273 = vrot.lane.b32.xlu0 %v2052_v17, %s2254_s2 }
 0x818   :  { %v1274_v31 = vpop.permute.xlu0 %1273 }
 0x819   :  { %v1276_v49 = vmul.f32 %v1274_v31, %v1259_v30 }
 0x81b   :  { %v1277_v50 = vpack.c.bf16 %v1276_v49, %v1276_v49 }
 0x81d   :  { %1903 = vmatmul.mubr.msk.bf16.vlgmr.msra.gmra.mrb[32].mxu1 %vm1058_vm1, %v1277_v50 }
 0x81e   :  { %1428 = vmatpush1.bf16.msra.mxu1 %v2459_v22  ;;  %1459 = vmatprep.mubr.bf16.mxu1 %v2257_v0 }
 0x81f   :  { %1429 = vmatprep.subr.bf16.mxu1 %v2461_v23 }
 0x822   :  { %1430 = vmatpush1.bf16.msra.mxu1 %v2466_v24 }
 0x823   :  { %1431 = vmatprep.subr.bf16.mxu1 %v2470_v25 }
 0x826   :  { %1432 = vmatpush1.bf16.msra.mxu1 %v2473_v26 }
 0x827   :  { %1433 = vmatprep.subr.bf16.mxu1 %v2476_v27 }
 0x82a   :  { %1434 = vmatpush1.bf16.msra.mxu1 %v2479_v28 }
 0x82b   :  { %1573 = vmatprep.subr.bf16.mxu1 %v2452_v20 }
 0x8f0   :  { %v1315_v14 = vpop.f32.mrb[32].mxu1 }
 0x8f1   :  { %v1325_v15 = vadd.f32 %v1323_v32, %v1315_v14  ;;  %v1317_v35 = vpop.f32.mrb[33].mxu1 }
 0x8f2   :  { %v1326_v36 = vadd.f32 %v1324_v33, %v1317_v35  ;;  %v1319_v37 = vpop.f32.mrb[34].mxu1 }
 0x8f3   :  { %v1320_v41 = vpop.f32.mrb[35].mxu1 }
 0x8f4   :  { %2053 = vtanh.f32 %v1326_v36  ;;  %v1542_v41 = vunpack.c.l.bf16 %v2634_v29 }
 0x8f5   :  { %2055 = vtanh.f32 %v1325_v15 }
 0x8fe   :  { %v2054_v42 = vpop.eup %2053 }
 0x8ff   :  { %1335 = vrot.lane.b32.xlu1 %v2054_v42, %s2254_s2  ;;  %v2056_v43 = vpop.eup %2055  ;;  %v1331_v53 = vmul.f32 0.5, %v2054_v42 }
 0x900   :  { %v1329_v18 = vmul.f32 0.5, %v2056_v43  ;;  %v1543_v43 = vunpack.c.h.bf16 %v2634_v29 }
 0x901   :  { %v1332_v46 = vadd.f32 0.5, %v1331_v53 }
 0x902   :  { %v1330_v44 = vadd.f32 0.5, %v1329_v18 }
 0x904   :  { %v1333_v38 = vmul.f32 %v1330_v44, %v1270_v39  ;;  %v1469_v39 = vunpack.c.l.bf16 %v2628_v59 }
 0x971   :  { %v1336_v19 = vpop.permute.xlu1 %1335 }
 0x972   :  { %v1338_v20 = vmul.f32 %v1336_v19, %v1330_v44 }
 0x974   :  { %1340 = vrot.lane.b32.xlu0 %v1338_v20, %s2254_s2 }
 0x9e6   :  { %v1341_v45 = vpop.permute.xlu0 %1340 }
 0x9e7   :  { %v1343_v47 = vadd.f32 %v1341_v45, %v1333_v38 }
 0x9e9   :  { %2057 = vtanh.f32 %v1343_v47 }
 0x9f3   :  { %v2058_v40 = vpop.eup %2057 }
 0x9f4   :  { %1346 = vrot.lane.b32.xlu1 %v2058_v40, %s2254_s2 }
 0xa66   :  { %v1347_v54 = vpop.permute.xlu1 %1346 }
 0xa67   :  { %v1349_v13 = vmul.f32 %v1347_v54, %v1332_v46 }
 0xa69   :  { %v1350_v4 = vpack.c.bf16 %v1349_v13, %v1349_v13 }
 0xa6b   :  { %1904 = vmatmul.mubr.msk.bf16.vlgmr.msra.gmra.mrb[44].mxu0 %vm1058_vm1, %v1350_v4 }
 0xa6c   :  { %1501 = vmatpush1.bf16.msra.mxu0 %v2459_v22  ;;  %1532 = vmatprep.mubr.bf16.mxu0 %v2257_v0 }
 0xa6d   :  { %1502 = vmatprep.subr.bf16.mxu0 %v2461_v23 }
 0xa70   :  { %1503 = vmatpush1.bf16.msra.mxu0 %v2466_v24 }
 0xa71   :  { %1504 = vmatprep.subr.bf16.mxu0 %v2470_v25 }
 0xa74   :  { %1505 = vmatpush1.bf16.msra.mxu0 %v2473_v26 }
 0xa75   :  { %1506 = vmatprep.subr.bf16.mxu0 %v2476_v27 }
 0xa78   :  { %1507 = vmatpush1.bf16.msra.mxu0 %v2479_v28 }
 0xb3e   :  { %v1388_v7 = vpop.f32.mrb[44].mxu0 }
 0xb3f   :  { %v1398_v3 = vadd.f32 %v1396_v5, %v1388_v7  ;;  %v1390_v57 = vpop.f32.mrb[45].mxu0 }
 0xb40   :  { %v1399_v6 = vadd.f32 %v1397_v48, %v1390_v57  ;;  %v1392_v21 = vpop.f32.mrb[46].mxu0 }
 0xb41   :  { %v1393_v58 = vpop.f32.mrb[47].mxu0  ;;  %v1615_v21 = vunpack.c.l.bf16 %v2640_v34 }
 0xb42   :  { %2059 = vtanh.f32 %v1399_v6 }
 0xb43   :  { %2061 = vtanh.f32 %v1398_v3 }
 0xb4c   :  { %v2060_v51 = vpop.eup %2059 }
 0xb4d   :  { %1408 = vrot.lane.b32.xlu0 %v2060_v51, %s2254_s2  ;;  %v2062_v52 = vpop.eup %2061  ;;  %v1404_v63 = vmul.f32 0.5, %v2060_v51  ;;  %v1616_v51 = vunpack.c.h.bf16 %v2640_v34  ;;  %v2024_v34 = vld [vmem:[#allocation11 + $0x8] sm:$0xff]  }
 0xb4e   :  { %v1402_v55 = vmul.f32 0.5, %v2062_v52 }
 0xb4f   :  { %v1405_v1 = vadd.f32 0.5, %v1404_v63 }
 0xb50   :  { %v1403_v10 = vadd.f32 0.5, %v1402_v55 }
 0xb52   :  { %v1406_v56 = vmul.f32 %v1403_v10, %v1343_v47 }
 0xbbf   :  { %v1409_v11 = vpop.permute.xlu0 %1408 }
 0xbc0   :  { %v1411_v61 = vmul.f32 %v1409_v11, %v1403_v10 }
 0xbc2   :  { %1413 = vrot.lane.b32.xlu1 %v1411_v61, %s2254_s2 }
 0xc34   :  { %v1414_v62 = vpop.permute.xlu1 %1413 }
 0xc35   :  { %v1416_v12 = vadd.f32 %v1414_v62, %v1406_v56 }
 0xc37   :  { %2063 = vtanh.f32 %v1416_v12 }
 0xc41   :  { %v2064_v60 = vpop.eup %2063 }
 0xc42   :  { %1419 = vrot.lane.b32.xlu0 %v2064_v60, %s2254_s2 }
 0xcb4   :  { %v1420_v9 = vpop.permute.xlu0 %1419 }
 0xcb5   :  { %v1422_v16 = vmul.f32 %v1420_v9, %v1405_v1  ;;  %v2023_v9 = vld [vmem:[#allocation11] sm:$0xff]  }
 0xcb7   :  { %v1423_v2 = vpack.c.bf16 %v1422_v16, %v1422_v16  ;;  %v2264_v16 = vmov 0.0  }
 0xcb8   :  { %1945 = vmatprep.subr.bf16.mxu0 %v2264_v16 }
 0xcb9   :  { %1905 = vmatmul.mubr.msk.bf16.vlgmr.msra.gmra.mrb[36].mxu1 %vm1058_vm1, %v1423_v2  ;;  %v2025_v2 = vld [vmem:[#allocation11 + $0x10] sm:$0xff]  }
 0xcba   :  { %1574 = vmatpush1.bf16.msra.mxu1 %v2459_v22  ;;  %1605 = vmatprep.mubr.bf16.mxu1 %v2257_v0 }
 0xcbb   :  { %1575 = vmatprep.subr.bf16.mxu1 %v2461_v23 }
 0xcbe   :  { %1576 = vmatpush1.bf16.msra.mxu1 %v2466_v24 }
 0xcbf   :  { %1577 = vmatprep.subr.bf16.mxu1 %v2470_v25 }
 0xcc2   :  { %1578 = vmatpush1.bf16.msra.mxu1 %v2473_v26 }
 0xcc3   :  { %1579 = vmatprep.subr.bf16.mxu1 %v2476_v27 }
 0xcc6   :  { %1580 = vmatpush1.bf16.msra.mxu1 %v2479_v28 }
 0xcc7   :  { %1957 = vmatprep.subr.bf16.mxu1 %v2264_v16 }
 0xd8c   :  { %v1461_v17 = vpop.f32.mrb[36].mxu1 }
 0xd8d   :  { %v1471_v22 = vadd.f32 %v1469_v39, %v1461_v17  ;;  %v1463_v30 = vpop.f32.mrb[37].mxu1 }
 0xd8e   :  { %v1472_v0 = vadd.f32 %v1470_v8, %v1463_v30  ;;  %v1465_v31 = vpop.f32.mrb[38].mxu1  ;;  %v2026_v8 = vld [vmem:[#allocation11 + $0x18] sm:$0xff]   ;;  %v2027_v30 = vld [vmem:[#allocation12] sm:$0xff]  }
 0xd8f   :  { %v1466_v23 = vpop.f32.mrb[39].mxu1  ;;  %v2029_v31 = vld [vmem:[#allocation12 + $0x10] sm:$0xff]  }
 0xd90   :  { %2065 = vtanh.f32 %v1472_v0  ;;  %v2028_v0 = vld [vmem:[#allocation12 + $0x8] sm:$0xff]  }
 0xd91   :  { %2067 = vtanh.f32 %v1471_v22 }
 0xd9a   :  { %v2066_v24 = vpop.eup %2065 }
 0xd9b   :  { %1481 = vrot.lane.b32.xlu1 %v2066_v24, %s2254_s2  ;;  %v2068_v25 = vpop.eup %2067  ;;  %v1477_v33 = vmul.f32 0.5, %v2066_v24  ;;  %v2030_v24 = vld [vmem:[#allocation12 + $0x18] sm:$0xff]  }
 0xd9c   :  { %v1475_v26 = vmul.f32 0.5, %v2068_v25  ;;  %v2031_v25 = vld [vmem:[#allocation12 + $0x20] sm:$0xff]  }
 0xd9d   :  { %v1478_v15 = vadd.f32 0.5, %v1477_v33  ;;  %v1908_v33 = vld [vmem:[%s2743_s6] ss:$0 sm:$0xff] }
 0xd9e   :  { %v1476_v27 = vadd.f32 0.5, %v1475_v26  ;;  %v2032_v26 = vld [vmem:[#allocation12 + $0x28] sm:$0xff]  }
 0xda0   :  { %v1479_v50 = vmul.f32 %v1476_v27, %v1416_v12 }
 0xe0d   :  { %v1482_v49 = vpop.permute.xlu1 %1481 }
 0xe0e   :  { %v1484_v28 = vmul.f32 %v1482_v49, %v1476_v27 }
 0xe10   :  { %1486 = vrot.lane.b32.xlu0 %v1484_v28, %s2254_s2 }
 0xe82   :  { %v1487_v32 = vpop.permute.xlu0 %1486 }
 0xe83   :  { %v1489_v59 = vadd.f32 %v1487_v32, %v1479_v50 }
 0xe85   :  { %2069 = vtanh.f32 %v1489_v59 }
 0xe8f   :  { %v2070_v14 = vpop.eup %2069 }
 0xe90   :  { %1492 = vrot.lane.b32.xlu1 %v2070_v14, %s2254_s2  ;;  %v2034_v14 = vld [vmem:[#allocation12 + $0x38] sm:$0xff]  }
 0xf02   :  { %v1493_v35 = vpop.permute.xlu1 %1492 }
 0xf03   :  { %v1495_v36 = vmul.f32 %v1493_v35, %v1478_v15 }
 0xf05   :  { %v1496_v37 = vpack.c.bf16 %v1495_v36, %v1495_v36 }
 0xf07   :  { %1906 = vmatmul.mubr.msk.bf16.vlgmr.msra.gmra.mrb[48].mxu0 %vm1058_vm1, %v1496_v37 }
 0xf08   :  { %1946 = vmatpush3.bf16.msra.mxu0 %v2023_v9  ;;  %1953 = vmatprep.mubr.msk.bf16.mxu0 %vm2265_vm2, %v2264_v16 }
 0xf09   :  { %1947 = vmatprep.subr.bf16.mxu0 %v2264_v16 }
 0xf0c   :  { %1948 = vmatpush3.bf16.msra.mxu0 %v2024_v34 }
 0xf0d   :  { %1949 = vmatprep.subr.bf16.mxu0 %v2264_v16 }
 0xf10   :  { %1950 = vmatpush3.bf16.msra.mxu0 %v2025_v2 }
 0xf11   :  { %1951 = vmatprep.subr.bf16.mxu0 %v2264_v16 }
 0xf14   :  { %1952 = vmatpush3.bf16.msra.mxu0 %v2026_v8 }
 0xfda   :  { %v1534_v42 = vpop.f32.mrb[48].mxu0 }
 0xfdb   :  { %v1544_v18 = vadd.f32 %v1542_v41, %v1534_v42  ;;  %v1536_v44 = vpop.f32.mrb[49].mxu0 }
 0xfdc   :  { %v1545_v19 = vadd.f32 %v1543_v43, %v1536_v44  ;;  %v1538_v20 = vpop.f32.mrb[50].mxu0 }
 0xfdd   :  { %v1539_v38 = vpop.f32.mrb[51].mxu0 }
 0xfde   :  { %2071 = vtanh.f32 %v1545_v19 }
 0xfdf   :  { %2073 = vtanh.f32 %v1544_v18  ;;  %v1914_v18 = vld [vmem:[%s2745_s8] ss:$0 sm:$0xff] }
 0xfe8   :  { %v2072_v45 = vpop.eup %2071 }
 0xfe9   :  { %1554 = vrot.lane.b32.xlu0 %v2072_v45, %s2254_s2  ;;  %v2074_v47 = vpop.eup %2073  ;;  %v1550_v7 = vmul.f32 0.5, %v2072_v45 }
 0xfea   :  { %v1548_v40 = vmul.f32 0.5, %v2074_v47 }
 0xfeb   :  { %v1551_v48 = vadd.f32 0.5, %v1550_v7 }
 0xfec   :  { %v1549_v53 = vadd.f32 0.5, %v1548_v40 }
 0xfee   :  { %v1552_v13 = vmul.f32 %v1549_v53, %v1489_v59  ;;  %v2033_v59 = vld [vmem:[#allocation12 + $0x30] sm:$0xff]  }
0x105b   :  { %v1555_v46 = vpop.permute.xlu0 %1554 }
0x105c   :  { %v1557_v54 = vmul.f32 %v1555_v46, %v1549_v53 }
0x105e   :  { %1559 = vrot.lane.b32.xlu1 %v1557_v54, %s2254_s2 }
0x10d0   :  { %v1560_v4 = vpop.permute.xlu1 %1559 }
0x10d1   :  { %v1562_v29 = vadd.f32 %v1560_v4, %v1552_v13 }
0x10d3   :  { %2075 = vtanh.f32 %v1562_v29 }
0x10dd   :  { %v2076_v5 = vpop.eup %2075 }
0x10de   :  { %1565 = vrot.lane.b32.xlu0 %v2076_v5, %s2254_s2 }
0x1150   :  { %v1566_v3 = vpop.permute.xlu0 %1565 }
0x1151   :  { %v1568_v57 = vmul.f32 %v1566_v3, %v1551_v48 }
0x1153   :  { %v1569_v6 = vpack.c.bf16 %v1568_v57, %v1568_v57 }
0x1155   :  { %1907 = vmatmul.mubr.msk.bf16.vlgmr.msra.gmra.mrb[40].mxu1 %vm1058_vm1, %v1569_v6 }
0x1156   :  { %1973 = vmatprep.mubr.msk.bf16.mxu1 %vm2265_vm2, %v2264_v16  ;;  %1958 = vmatpush3.bf16.msra.mxu1 %v2027_v30 }
0x1157   :  { %1959 = vmatprep.subr.bf16.mxu1 %v2264_v16 }
0x115a   :  { %1960 = vmatpush3.bf16.msra.mxu1 %v2028_v0 }
0x115b   :  { %1961 = vmatprep.subr.bf16.mxu1 %v2264_v16 }
0x115e   :  { %1962 = vmatpush3.bf16.msra.mxu1 %v2029_v31 }
0x115f   :  { %1963 = vmatprep.subr.bf16.mxu1 %v2264_v16 }
0x1162   :  { %1964 = vmatpush3.bf16.msra.mxu1 %v2030_v24 }
0x1163   :  { %1965 = vmatprep.subr.bf16.mxu1 %v2264_v16 }
0x1166   :  { %1966 = vmatpush3.bf16.msra.mxu1 %v2031_v25 }
0x1167   :  { %1967 = vmatprep.subr.bf16.mxu1 %v2264_v16 }
0x116a   :  { %1968 = vmatpush3.bf16.msra.mxu1 %v2032_v26 }
0x116b   :  { %1969 = vmatprep.subr.bf16.mxu1 %v2264_v16 }
0x116e   :  { %1970 = vmatpush3.bf16.msra.mxu1 %v2033_v59 }
0x116f   :  { %1971 = vmatprep.subr.bf16.mxu1 %v2264_v16 }
0x1172   :  { %1972 = vmatpush3.bf16.msra.mxu1 %v2034_v14 }
0x1228   :  { %v1607_v58 = vpop.f32.mrb[40].mxu1 }
0x1229   :  { %v1617_v52 = vadd.f32 %v1615_v21, %v1607_v58  ;;  %v1609_v55 = vpop.f32.mrb[41].mxu1 }
0x122a   :  { %v1618_v10 = vadd.f32 %v1616_v51, %v1609_v55  ;;  %v1611_v11 = vpop.f32.mrb[42].mxu1 }
0x122b   :  { %v1612_v61 = vpop.f32.mrb[43].mxu1 }
0x122c   :  { %2077 = vtanh.f32 %v1618_v10 }
0x122d   :  { %2079 = vtanh.f32 %v1617_v52 }
0x1236   :  { %v2078_v56 = vpop.eup %2077 }
0x1237   :  { %1627 = vrot.lane.b32.xlu1 %v2078_v56, %s2254_s2  ;;  %v2080_v62 = vpop.eup %2079  ;;  %v1623_v27 = vmul.f32 0.5, %v2078_v56 }
0x1238   :  { %v1621_v12 = vmul.f32 0.5, %v2080_v62 }
0x1239   :  { %v1624_v49 = vadd.f32 0.5, %v1623_v27 }
0x123a   :  { %v1622_v60 = vadd.f32 0.5, %v1621_v12 }
0x123c   :  { %v1625_v39 = vmul.f32 %v1622_v60, %v1562_v29 }
0x12a9   :  { %v1628_v63 = vpop.permute.xlu1 %1627 }
0x12aa   :  { %v1630_v1 = vmul.f32 %v1628_v63, %v1622_v60 }
0x12ac   :  { %1632 = vrot.lane.b32.xlu0 %v1630_v1, %s2254_s2 }
0x131e   :  { %v1633_v17 = vpop.permute.xlu0 %1632 }
0x131f   :  { %v1635_v22 = vadd.f32 %v1633_v17, %v1625_v39 }
0x1321   :  { %2081 = vtanh.f32 %v1635_v22 }
0x132b   :  { %v2082_v23 = vpop.eup %2081 }
0x132c   :  { %1638 = vrot.lane.b32.xlu1 %v2082_v23, %s2254_s2  ;;  %s2266_s2 = smov [#allocation14]  }
0x132d   :  { %s1845_s19 = sshll.u32 %s2266_s2, 4  ;;  %s1846_s19 = int_to_ptr.vmem [resolvable:$true] %s1845_s19 }
0x132e   :  { %s2215_s6 = scalar_lea.vmem %s1846_s19, 128  ;;  %p2220_p7 = scmp.lt.s32.totalorder %s1846_s19, %s1846_s19 }
0x132f   :  { %p2216_p6 = scmp.ne.s32.totalorder %s1846_s19, %s2215_s6  ;;  %p2221_p8 = scmp.lt.s32.totalorder %s2215_s6, %s2215_s6 }
0x1331   :  { %p2222_p9 = por %p2221_p8, %p2220_p7 }
0x1333   :  { %p2223_p10 = pnand %p2222_p9, %p2216_p6 }
0x139e   :  { %v1639_v28 = vpop.permute.xlu1 %1638 }
0x139f   :  { %v1641_v50 = vmul.f32 %v1639_v28, %v1624_v49 }
0x13a1   :  { %v1642_v32 = vpack.c.bf16 %v1641_v50, %v1641_v50 }
0x13a3   :  { %1954 = vmatmul.mubr.msk.bf16.vlgmr.msra.gmra.mrb[52].mxu0 %vm1058_vm1, %v1642_v32 }
0x1476   :  { %v1719_v15 = vpop.f32.mrb[52].mxu0 }
0x1477   :  { %v1720_v35 = vadd.f32 %v1908_v33, %v1719_v15  ;;  %v1955_v36 = vpop.f32.mrb[53].mxu0 }
0x1478   :  { %v1722_v37 = vpop.f32.mrb[54].mxu0 }
0x1479   :  { %v1725_v41 = vmax.f32 %v1720_v35, 0.0  ;;  %v1956_v42 = vpop.f32.mrb[55].mxu0 }
0x147b   :  { %v1726_v43 = vpack.c.bf16 %v1725_v41, %v1725_v41 }
0x147d   :  { %1974 = vmatmul.mubr.bf16.vlgmr.msra.gmra.mrb[44].mxu1 %v1726_v43 }
0x1550   :  { %v1832_v44 = vpop.f32.mrb[44].mxu1 }
0x1551   :  { %v1833_v19 = vadd.f32 %v1914_v18, %v1832_v44  ;;  %v1975_v20 = vpop.f32.mrb[45].mxu1 }
0x1552   :  { %v1835_v38 = vpop.f32.mrb[46].mxu1 }
0x1553   :  { %1838 = vst [vmem:[#allocation14] sm:$0xff] %v1833_v19  ;;  %v1976_v45 = vpop.f32.mrb[47].mxu1 }
0x1554   :  { %2226 = shalt.err (!%p2223_p10)
}
0x1555   :  { %s2227_s8 = scalar_lea.hbm %s2746_s9, 128 }
0x1556   :  { %p2228_p11 = scmp.ne.s32.totalorder %s2746_s9, %s2227_s8  ;;  %p2231_p12 = scmp.lt.u32.totalorder %s2227_s8, %s2746_s9 }
0x1558   :  { %p2233_p13 = pnand %p2231_p12, %p2228_p11 }
0x155a   :  { %2236 = shalt.err (!%p2233_p13)
}
0x155b   :  { %1848 = dma.vmem_to_hbm [thread:$0]  %s1846_s19, 128, %s2746_s9, [#allocation5]  }
0x155c   :  { %2245 = dma.done.wait [#allocation5], 128  }
0x155d   :  { %2246 = vsyncadd [#allocation5], 4294967168 }
0x155e   :  { %1852 = vsyncpa [#allocation4], 1 }
0x155f   :  { %1853 = vsyncpa [#allocation7], 1 }
0x1560   :  { %1854 = vsyncpa [#allocation10], 1 }
0x1561   :  { %1855 = vsyncpa [#allocation13], 1 }
0x1562   :  { %1856 = vsyncpa [#allocation5], 1 }

</bundles_post_ra>
